<compile_context>
chip_gen: v7x
topology: tpu7x:2x2x1
jax: 0.10.0
libtpu: 0.0.40
codegen_flags: <defaults>
</compile_context>

<pallas_src>
import numpy as np
import jax
import jax.numpy as jnp
from jax import lax
from jax.experimental import pallas as pl
from jax.experimental.pallas import tpu as pltpu

ALPHA = 0.01   # IKDLoss(alpha=0.01)
BETA = 2.0     # IKDLoss(beta=2)
GAMMA = 1.0    # IKDLoss(gamma=1)
EPS = 1e-12    # F.normalize eps


# ----------------------------- tiling helpers --------------------------------
def _pick_tile(n, max_tile):
    """Largest tile <= max_tile dividing n, preferring sublane-friendly multiples."""
    if n <= max_tile:
        return n
    for align in (256, 128, 64, 32, 16, 8):
        t = (max_tile // align) * align
        while t >= align:
            if n % t == 0:
                return t
            t -= align
    return n  # fallback: one big block (e.g. odd N)


def _norm_tile(n, c):
    # Keep each f32 input block around <= 1 MiB so the double-buffered pairs plus
    # the bf16 output stay well inside the default scoped VMEM on v5e/v6e/v7x.
    budget_rows = max(128, (1 << 20) // max(4 * c, 1))
    return _pick_tile(n, min(1024, budget_rows))


def _gram_tile_default():
    # v5e MXU is 4x128x128 -> 128-wide tiles; v6e/v7x MXU is 2x256x256 -> 256.
    try:
        kind = jax.devices()[0].device_kind.lower()
    except Exception:
        return 256
    return 128 if ("v5 lite" in kind or "v5e" in kind) else 256


# ----------------------------- Kernel 1 --------------------------------------
def _dif_kernel(qe_ref, qa_ref, qcat_ref, dif_ref):
    qe = qe_ref[...]
    qa = qa_ref[...]
    qe_n = qe / jnp.maximum(jnp.sqrt(jnp.sum(qe * qe, axis=-1, keepdims=True)), EPS)
    qa_n = qa / jnp.maximum(jnp.sqrt(jnp.sum(qa * qa, axis=-1, keepdims=True)), EPS)
    # Fused bf16 output [Qe_n | Qa_n]: halves HBM writeback + Gram re-read traffic
    # and feeds the MXU its native bf16 path.
    qcat_ref[...] = jnp.concatenate([qe_n, qa_n], axis=-1).astype(jnp.bfloat16)
    d = qe_n - qa_n
    dif_ref[...] = jnp.sum(d * d, axis=-1, keepdims=True)


def _normalize_and_dif(qe, qa):
    N, C = qe.shape
    tn = _norm_tile(N, C)
    return pl.pallas_call(
        _dif_kernel,
        out_shape=(
            jax.ShapeDtypeStruct((N, 2 * C), jnp.bfloat16),
            jax.ShapeDtypeStruct((N, 1), jnp.float32),
        ),
        grid_spec=pltpu.PrefetchScalarGridSpec(
            num_scalar_prefetch=0,
            grid=(N // tn,),
            in_specs=[
                pl.BlockSpec((tn, C), lambda i: (i, 0)),
                pl.BlockSpec((tn, C), lambda i: (i, 0)),
            ],
            out_specs=[
                pl.BlockSpec((tn, 2 * C), lambda i: (i, 0)),
                pl.BlockSpec((tn, 1), lambda i: (i, 0)),
            ],
        ),
        compiler_params=pltpu.CompilerParams(dimension_semantics=("parallel",)),
    )(qe, qa)


# ----------------------------- Kernel 2 --------------------------------------
def _gram_kernel(ii_ref, jj_ref, nact_ref, a_i_ref, a_j_ref, out_ref, acc_ref):
    p = pl.program_id(0)

    @pl.when(p == 0)
    def _():
        acc_ref[...] = jnp.zeros_like(acc_ref)

    i = ii_ref[p]
    j = jj_ref[p]
    na = nact_ref[0]

    # Skip tile pairs with no selected rows (rows are compacted to the front).
    @pl.when((i < na) & (j < na))
    def _():
        two_c = a_i_ref.shape[-1]
        c = two_c // 2
        col = lax.broadcasted_iota(jnp.int32, (1, two_c), 1)
        sign = jnp.where(col < c, 1.0, -1.0).astype(a_j_ref.dtype)
        # [Qe|Qa]_i @ ([Qe|-Qa]_j)^T == Ge_ij - Ga_ij : one bf16 MXU pass, K = 2C.
        d = lax.dot_general(a_i_ref[...], a_j_ref[...] * sign,
                            (((1,), (1,)), ((), ())),
                            preferred_element_type=jnp.float32)
        # Upper-triangle tile enumeration: off-diagonal tile blocks count twice.
        w = jnp.where(i == j, 1.0, 2.0).astype(jnp.float32)
        acc_ref[...] = acc_ref[...] + (d * d) * w

    @pl.when(p == pl.num_programs(0) - 1)
    def _():
        out_ref[...] = jnp.sum(acc_ref[...], axis=(0, 1), keepdims=True)


def _masked_gram_sum(qc, n_act_tiles, tn):
    """qc: (N, 2C) bf16, selected rows first, all other rows exactly zero."""
    N, two_c = qc.shape
    nt = N // tn
    # Static upper-triangle pair list, i-major (i-panel DMA dedups across a row).
    # SMEM footprint is O(nt^2) int32 — fine for typical feature maps.
    ii_np, jj_np = np.triu_indices(nt)
    npairs = int(ii_np.shape[0])
    ii = jnp.asarray(ii_np, jnp.int32)
    jj = jnp.asarray(jj_np, jnp.int32)
    nact = jnp.reshape(n_act_tiles, (1,)).astype(jnp.int32)

    def _clamp(idx, na_ref):
        # Clamp inactive tiles onto the last active block so consecutive skipped
        # grid steps reuse the already-resident block (no extra DMA).
        return jnp.minimum(idx, jnp.maximum(na_ref[0] - 1, 0))

    def i_map(p, ii_ref, jj_ref, na_ref):
        return _clamp(ii_ref[p], na_ref), 0

    def j_map(p, ii_ref, jj_ref, na_ref):
        return _clamp(jj_ref[p], na_ref), 0

    out = pl.pallas_call(
        _gram_kernel,
        out_shape=jax.ShapeDtypeStruct((1, 1), jnp.float32),
        grid_spec=pltpu.PrefetchScalarGridSpec(
            num_scalar_prefetch=3,
            grid=(npairs,),
            in_specs=[
                pl.BlockSpec((tn, two_c), i_map),
                pl.BlockSpec((tn, two_c), j_map),
            ],
            out_specs=pl.BlockSpec((1, 1), lambda p, ii_ref, jj_ref, na_ref: (0, 0)),
            scratch_shapes=[pltpu.VMEM((tn, tn), jnp.float32)],
        ),
        compiler_params=pltpu.CompilerParams(dimension_semantics=("arbitrary",)),
    )(ii, jj, nact, qc, qc)
    return out[0, 0]


# ----------------------------- IKD forward -----------------------------------
@jax.jit
def ikd_level_loss(fe, fa, margin_prev):
    B, C, H, W = fe.shape
    qe = jnp.transpose(fe, (0, 2, 3, 1)).reshape(-1, C).astype(jnp.float32)
    qa = jnp.transpose(fa, (0, 2, 3, 1)).reshape(-1, C).astype(jnp.float32)
    N = qe.shape[0]

    qcat, dif2 = _normalize_and_dif(qe, qa)
    dif = dif2[:, 0]

    mu = jnp.mean(dif)
    sigma = jnp.std(dif, ddof=1)                        # torch .std() is unbiased
    margin_new = ALPHA * margin_prev + (1.0 - ALPHA) * (mu + BETA * sigma)

    sel = dif >= margin_new
    k_i = jnp.sum(sel.astype(jnp.int32))
    k = k_i.astype(jnp.float32)
    l_ps = jnp.sum(jnp.where(sel, dif, 0.0)) / jnp.maximum(k, 1.0)

    if GAMMA > 0:
        tn = _pick_tile(N, _gram_tile_default())
        # Compact selected rows to the front, zero everything else (zero rows/cols
        # contribute nothing to the Gram-difference sum).
        order = jnp.argsort(jnp.where(sel, 0, 1).astype(jnp.int32))
        qz = jnp.where(sel[:, None], qcat, jnp.zeros_like(qcat))
        qc = jnp.take(qz, order, axis=0)
        n_act = (k_i + tn - 1) // tn                    # number of active row tiles
        gsum = _masked_gram_sum(qc, n_act, tn)
        l_cs = gsum / jnp.maximum(k * k, 1.0)
        loss_sel = l_ps + GAMMA * l_cs
    else:
        loss_sel = l_ps

    # "No elements are selected in IKD loss, return average" branch
    loss = jnp.where(k_i > 0, loss_sel, mu)
    return loss, margin_new


def ikd_loss_forward(fe_list, fa_list, margins=None):
    if margins is None:                                 # self.margin is None -> zeros
        margins = [jnp.float32(0.0) for _ in fe_list]
    total = jnp.float32(0.0)
    new_margins = []
    for fe, fa, m in zip(fe_list, fa_list, margins):
        l, m_new = ikd_level_loss(fe, fa, m)
        total = total + l
        new_margins.append(m_new)
    return total, new_margins


# ----------------------------- numpy reference --------------------------------
def _ref_level(fe, fa, margin):
    fe = np.asarray(fe, np.float32)
    fa = np.asarray(fa, np.float32)
    B, C, H, W = fe.shape
    fe_n = fe / np.maximum(np.sqrt((fe ** 2).sum(1, keepdims=True)), EPS)
    fa_n = fa / np.maximum(np.sqrt((fa ** 2).sum(1, keepdims=True)), EPS)
    dif = ((fe_n - fa_n) ** 2).sum(1)
    mu = dif.mean()
    std = dif.std(ddof=1)
    margin = ALPHA * margin + (1 - ALPHA) * (mu + BETA * std)
    sel = (dif >= margin).reshape(-1)
    if sel.sum() == 0:
        return float(dif.mean()), float(margin)
    dsel = dif.reshape(-1)[sel]
    l_ps = dsel.mean()
    Qe = fe_n.transpose(0, 2, 3, 1).reshape(-1, C)[sel]
    Qa = fa_n.transpose(0, 2, 3, 1).reshape(-1, C)[sel]
    Ge = Qe @ Qe.T
    Ga = Qa @ Qa.T
    l_cs = ((Ge - Ga) ** 2).mean()
    return float(l_ps + GAMMA * l_cs), float(margin)


if __name__ == "__main__":
    key = jax.random.PRNGKey(0)
    k1, k2, k3, k4 = jax.random.split(key, 4)
    # Two-level feature pyramid (student fe vs teacher fa), NCHW like PyTorch.
    fe1 = jax.random.normal(k1, (2, 8, 8, 8), jnp.float32)     # N = 2*8*8 = 128
    fa1 = fe1 + 0.3 * jax.random.normal(k2, (2, 8, 8, 8), jnp.float32)
    fe2 = jax.random.normal(k3, (2, 16, 4, 4), jnp.float32)    # N = 2*4*4 = 32
    fa2 = fe2 + 0.3 * jax.random.normal(k4, (2, 16, 4, 4), jnp.float32)

    loss, margins = ikd_loss_forward([fe1, fe2], [fa1, fa2])
    loss = jax.block_until_ready(loss)

    # Cross-check against a pure-numpy f32 reference of the PyTorch semantics.
    # Tolerance accounts for the bf16 Gram-matrix path (f32 MXU accumulation).
    ref_total = 0.0
    for fe, fa in zip([fe1, fe2], [fa1, fa2]):
        l_ref, _ = _ref_level(np.asarray(fe), np.asarray(fa), 0.0)
        ref_total += l_ref
    assert np.allclose(float(loss), float(ref_total), rtol=2e-2, atol=1e-4), (
        float(loss), float(ref_total))

    print("KERNEL_OK")
</pallas_src>

<mosaic_0001>
module attributes {stable_mosaic.version = 11 : i64} {
  func.func @_dif_kernel(%arg0: i32, %arg1: memref<128x8xf32, #tpu.memory_space<vmem>>, %arg2: memref<128x8xf32, #tpu.memory_space<vmem>>, %arg3: memref<128x16xbf16, #tpu.memory_space<vmem>>, %arg4: memref<128x1xf32, #tpu.memory_space<vmem>>) attributes {dimension_semantics = [#tpu.dimension_semantics<parallel>], iteration_bounds = array<i64: 1>, scalar_prefetch = 0 : i64, scratch_operands = 0 : i64, tpu.core_type = #tpu.core_type<tc>, window_params = [{transform_indices = @transform_0, window_bounds = array<i64: 128, 8>}, {transform_indices = @transform_1, window_bounds = array<i64: 128, 8>}, {transform_indices = @transform_2, window_bounds = array<i64: 128, 16>}, {transform_indices = @transform_3, window_bounds = array<i64: 128, 1>}]} {
    %c0 = arith.constant 0 : index
    %c0_0 = arith.constant 0 : index
    %0 = vector.load %arg1[%c0, %c0_0] : memref<128x8xf32, #tpu.memory_space<vmem>>, vector<128x8xf32>
    %c0_1 = arith.constant 0 : index
    %c0_2 = arith.constant 0 : index
    %1 = vector.load %arg2[%c0_1, %c0_2] : memref<128x8xf32, #tpu.memory_space<vmem>>, vector<128x8xf32>
    %2 = arith.mulf %0, %0 : vector<128x8xf32>
    %cst = arith.constant dense<0.000000e+00> : vector<128xf32>
    %3 = vector.multi_reduction <add>, %2, %cst [1] : vector<128x8xf32> to vector<128xf32>
    %4 = vector.shape_cast %3 : vector<128xf32> to vector<128x1xf32>
    %5 = math.sqrt %4 : vector<128x1xf32>
    %cst_3 = arith.constant 9.99999996E-13 : f32
    %6 = vector.broadcast %cst_3 : f32 to vector<128x1xf32>
    %7 = arith.maximumf %5, %6 : vector<128x1xf32>
    %8 = vector.broadcast %7 : vector<128x1xf32> to vector<128x8xf32>
    %9 = arith.divf %0, %8 : vector<128x8xf32>
    %10 = arith.mulf %1, %1 : vector<128x8xf32>
    %cst_4 = arith.constant dense<0.000000e+00> : vector<128xf32>
    %11 = vector.multi_reduction <add>, %10, %cst_4 [1] : vector<128x8xf32> to vector<128xf32>
    %12 = vector.shape_cast %11 : vector<128xf32> to vector<128x1xf32>
    %13 = math.sqrt %12 : vector<128x1xf32>
    %cst_5 = arith.constant 9.99999996E-13 : f32
    %14 = vector.broadcast %cst_5 : f32 to vector<128x1xf32>
    %15 = arith.maximumf %13, %14 : vector<128x1xf32>
    %16 = vector.broadcast %15 : vector<128x1xf32> to vector<128x8xf32>
    %17 = arith.divf %1, %16 : vector<128x8xf32>
    %18 = tpu.concatenate %9, %17 in 1 : vector<128x8xf32>, vector<128x8xf32> -> vector<128x16xf32>
    %19 = arith.truncf %18 : vector<128x16xf32> to vector<128x16xbf16>
    %c0_6 = arith.constant 0 : index
    %c0_7 = arith.constant 0 : index
    %20 = vector.load %arg3[%c0_6, %c0_7] : memref<128x16xbf16, #tpu.memory_space<vmem>>, vector<128x16xbf16>
    tpu.vector_store %arg3[%c0_6, %c0_7], %19 {strides = array<i32>} : memref<128x16xbf16, #tpu.memory_space<vmem>>, vector<128x16xbf16>,
    %21 = arith.subf %9, %17 : vector<128x8xf32>
    %22 = arith.mulf %21, %21 : vector<128x8xf32>
    %cst_8 = arith.constant dense<0.000000e+00> : vector<128xf32>
    %23 = vector.multi_reduction <add>, %22, %cst_8 [1] : vector<128x8xf32> to vector<128xf32>
    %24 = vector.shape_cast %23 : vector<128xf32> to vector<128x1xf32>
    %c0_9 = arith.constant 0 : index
    %c0_10 = arith.constant 0 : index
    %25 = vector.load %arg4[%c0_9, %c0_10] : memref<128x1xf32, #tpu.memory_space<vmem>>, vector<128x1xf32>
    tpu.vector_store %arg4[%c0_9, %c0_10], %24 {strides = array<i32>} : memref<128x1xf32, #tpu.memory_space<vmem>>, vector<128x1xf32>,
    return
  }
  func.func @transform_0(%arg0: i32) -> (i32, i32) {
    %c0_i32 = arith.constant 0 : i32
    %c0_i32_0 = arith.constant 0 : i32
    return %arg0, %c0_i32 : i32, i32
  }
  func.func @transform_1(%arg0: i32) -> (i32, i32) {
    %c0_i32 = arith.constant 0 : i32
    %c0_i32_0 = arith.constant 0 : i32
    return %arg0, %c0_i32 : i32, i32
  }
  func.func @transform_2(%arg0: i32) -> (i32, i32) {
    %c0_i32 = arith.constant 0 : i32
    %c0_i32_0 = arith.constant 0 : i32
    return %arg0, %c0_i32 : i32, i32
  }
  func.func @transform_3(%arg0: i32) -> (i32, i32) {
    %c0_i32 = arith.constant 0 : i32
    %c0_i32_0 = arith.constant 0 : i32
    return %arg0, %c0_i32 : i32, i32
  }
}

module attributes {stable_mosaic.version = 11 : i64} {
  func.func @_gram_kernel(%arg0: i32, %arg1: memref<1xi32, #tpu.memory_space<smem>>, %arg2: memref<1xi32, #tpu.memory_space<smem>>, %arg3: memref<1xi32, #tpu.memory_space<smem>>, %arg4: memref<128x16xbf16, #tpu.memory_space<vmem>>, %arg5: memref<128x16xbf16, #tpu.memory_space<vmem>>, %arg6: memref<1x1xf32, #tpu.memory_space<vmem>>, %arg7: memref<128x128xf32, #tpu.memory_space<vmem>>) attributes {dimension_semantics = [#tpu.dimension_semantics<arbitrary>], iteration_bounds = array<i64: 1>, scalar_prefetch = 3 : i64, scratch_operands = 1 : i64, tpu.core_type = #tpu.core_type<tc>, window_params = [{transform_indices = @transform_0, window_bounds = array<i64: 128, 16>}, {transform_indices = @transform_1, window_bounds = array<i64: 128, 16>}, {pipeline_mode = #tpu.pipeline_mode<synchronous>, transform_indices = @transform_2, window_bounds = array<i64: 1, 1>}]} {
    %c0_i32 = arith.constant 0 : i32
    %0 = arith.cmpi eq, %arg0, %c0_i32 : i32
    %1 = arith.extui %0 : i1 to i32
    %c0_i32_0 = arith.constant 0 : i32
    %2 = arith.cmpi ne, %1, %c0_i32_0 : i32
    scf.if %2 {
      %cst = arith.constant 0.000000e+00 : f32
      %16 = vector.broadcast %cst : f32 to vector<128x128xf32>
      %c0_4 = arith.constant 0 : index
      %c0_5 = arith.constant 0 : index
      %17 = vector.load %arg7[%c0_4, %c0_5] : memref<128x128xf32, #tpu.memory_space<vmem>>, vector<128x128xf32>
      tpu.vector_store %arg7[%c0_4, %c0_5], %16 {strides = array<i32>} : memref<128x128xf32, #tpu.memory_space<vmem>>, vector<128x128xf32>,
    } else {
    }
    %3 = arith.index_cast %arg0 : i32 to index
    %4 = memref.load %arg1[%3] : memref<1xi32, #tpu.memory_space<smem>>
    %5 = arith.index_cast %arg0 : i32 to index
    %6 = memref.load %arg2[%5] : memref<1xi32, #tpu.memory_space<smem>>
    %c0 = arith.constant 0 : index
    %7 = memref.load %arg3[%c0] : memref<1xi32, #tpu.memory_space<smem>>
    %8 = arith.cmpi slt, %4, %7 : i32
    %9 = arith.cmpi slt, %6, %7 : i32
    %10 = arith.andi %8, %9 : i1
    %11 = arith.extui %10 : i1 to i32
    %c0_i32_1 = arith.constant 0 : i32
    %12 = arith.cmpi ne, %11, %c0_i32_1 : i32
    scf.if %12 {
      %16 = tpu.iota {dimensions = array<i32: 1>} : vector<1x16xi32>
      %c8_i32 = arith.constant 8 : i32
      %17 = vector.broadcast %c8_i32 : i32 to vector<1x16xi32>
      %18 = arith.cmpi slt, %16, %17 : vector<1x16xi32>
      %cst = arith.constant 1.000000e+00 : f32
      %cst_4 = arith.constant -1.000000e+00 : f32
      %19 = vector.broadcast %cst : f32 to vector<1x16xf32>
      %20 = vector.broadcast %cst_4 : f32 to vector<1x16xf32>
      %21 = arith.select %18, %19, %20 : vector<1x16xi1>, vector<1x16xf32>
      %22 = arith.truncf %21 : vector<1x16xf32> to vector<1x16xbf16>
      %c0_5 = arith.constant 0 : index
      %c0_6 = arith.constant 0 : index
      %23 = vector.load %arg4[%c0_5, %c0_6] : memref<128x16xbf16, #tpu.memory_space<vmem>>, vector<128x16xbf16>
      %c0_7 = arith.constant 0 : index
      %c0_8 = arith.constant 0 : index
      %24 = vector.load %arg5[%c0_7, %c0_8] : memref<128x16xbf16, #tpu.memory_space<vmem>>, vector<128x16xbf16>
      %25 = vector.broadcast %22 : vector<1x16xbf16> to vector<128x16xbf16>
      %26 = arith.mulf %24, %25 : vector<128x16xbf16>
      %cst_9 = arith.constant dense<0.000000e+00> : vector<128x128xf32>
      %27 = tpu.matmul %23, %26, %cst_9 {dimension_numbers = #tpu.dot_dimension_numbers<[1], [1], [0], [0], [0, 0, 1, 0], [], []>} : vector<128x16xbf16>, vector<128x16xbf16>, vector<128x128xf32> -> vector<128x128xf32>
      %28 = arith.cmpi eq, %4, %6 : i32
      %cst_10 = arith.constant 1.000000e+00 : f32
      %cst_11 = arith.constant 2.000000e+00 : f32
      %29 = arith.select %28, %cst_10, %cst_11 : f32
      %c0_12 = arith.constant 0 : index
      %c0_13 = arith.constant 0 : index
      %30 = vector.load %arg7[%c0_12, %c0_13] : memref<128x128xf32, #tpu.memory_space<vmem>>, vector<128x128xf32>
      %31 = arith.mulf %27, %27 : vector<128x128xf32>
      %32 = vector.broadcast %29 : f32 to vector<128x128xf32>
      %33 = arith.mulf %31, %32 : vector<128x128xf32>
      %34 = arith.addf %30, %33 : vector<128x128xf32>
      %c0_14 = arith.constant 0 : index
      %c0_15 = arith.constant 0 : index
      %35 = vector.load %arg7[%c0_14, %c0_15] : memref<128x128xf32, #tpu.memory_space<vmem>>, vector<128x128xf32>
      tpu.vector_store %arg7[%c0_14, %c0_15], %34 {strides = array<i32>} : memref<128x128xf32, #tpu.memory_space<vmem>>, vector<128x128xf32>,
    } else {
    }
    %c0_i32_2 = arith.constant 0 : i32
    %13 = arith.cmpi eq, %arg0, %c0_i32_2 : i32
    %14 = arith.extui %13 : i1 to i32
    %c0_i32_3 = arith.constant 0 : i32
    %15 = arith.cmpi ne, %14, %c0_i32_3 : i32
    scf.if %15 {
      %c0_4 = arith.constant 0 : index
      %c0_5 = arith.constant 0 : index
      %16 = vector.load %arg7[%c0_4, %c0_5] : memref<128x128xf32, #tpu.memory_space<vmem>>, vector<128x128xf32>
      %17 = vector.shape_cast %16 : vector<128x128xf32> to vector<1x128x128xf32>
      %cst = arith.constant dense<0.000000e+00> : vector<1xf32>
      %18 = vector.multi_reduction <add>, %17, %cst [1, 2] : vector<1x128x128xf32> to vector<1xf32>
      %19 = vector.shape_cast %18 : vector<1xf32> to vector<1x1x1xf32>
      %20 = vector.extract %19[0, 0, 0] : f32 from vector<1x1x1xf32>
      %21 = vector.broadcast %20 : f32 to vector<1x1xf32>
      %c0_6 = arith.constant 0 : index
      %c0_7 = arith.constant 0 : index
      %22 = vector.load %arg6[%c0_6, %c0_7] : memref<1x1xf32, #tpu.memory_space<vmem>>, vector<1x1xf32>
      tpu.vector_store %arg6[%c0_6, %c0_7], %21 {strides = array<i32>} : memref<1x1xf32, #tpu.memory_space<vmem>>, vector<1x1xf32>,
    } else {
    }
    return
  }
  func.func @transform_0(%arg0: i32, %arg1: memref<1xi32, #tpu.memory_space<smem>>, %arg2: memref<1xi32, #tpu.memory_space<smem>>, %arg3: memref<1xi32, #tpu.memory_space<smem>>) -> (i32, i32) {
    %0 = arith.index_cast %arg0 : i32 to index
    %1 = memref.load %arg1[%0] : memref<1xi32, #tpu.memory_space<smem>>
    %c0 = arith.constant 0 : index
    %2 = memref.load %arg3[%c0] : memref<1xi32, #tpu.memory_space<smem>>
    %c1_i32 = arith.constant 1 : i32
    %3 = arith.subi %2, %c1_i32 : i32
    %c0_i32 = arith.constant 0 : i32
    %4 = arith.maxsi %3, %c0_i32 : i32
    %5 = arith.minsi %1, %4 : i32
    %c0_i32_0 = arith.constant 0 : i32
    %c0_i32_1 = arith.constant 0 : i32
    return %5, %c0_i32_0 : i32, i32
  }
  func.func @transform_1(%arg0: i32, %arg1: memref<1xi32, #tpu.memory_space<smem>>, %arg2: memref<1xi32, #tpu.memory_space<smem>>, %arg3: memref<1xi32, #tpu.memory_space<smem>>) -> (i32, i32) {
    %0 = arith.index_cast %arg0 : i32 to index
    %1 = memref.load %arg2[%0] : memref<1xi32, #tpu.memory_space<smem>>
    %c0 = arith.constant 0 : index
    %2 = memref.load %arg3[%c0] : memref<1xi32, #tpu.memory_space<smem>>
    %c1_i32 = arith.constant 1 : i32
    %3 = arith.subi %2, %c1_i32 : i32
    %c0_i32 = arith.constant 0 : i32
    %4 = arith.maxsi %3, %c0_i32 : i32
    %5 = arith.minsi %1, %4 : i32
    %c0_i32_0 = arith.constant 0 : i32
    %c0_i32_1 = arith.constant 0 : i32
    return %5, %c0_i32_0 : i32, i32
  }
  func.func @transform_2(%arg0: i32, %arg1: memref<1xi32, #tpu.memory_space<smem>>, %arg2: memref<1xi32, #tpu.memory_space<smem>>, %arg3: memref<1xi32, #tpu.memory_space<smem>>) -> (i32, i32) {
    %c0_i32 = arith.constant 0 : i32
    %c0_i32_0 = arith.constant 0 : i32
    %c0_i32_1 = arith.constant 0 : i32
    return %c0_i32, %c0_i32_0 : i32, i32
  }
}

</mosaic_0001>

<bundles_post_ra>
// kernel: ikd_level_loss.2
= control target key start
LH: loop header
LB: loop body
LE: loop exit
PB: predicated region body
PF: predicated region fallthrough
CT: control target
= control target key end

     0   :  { %vm61_vm0 = vcmask 64512   ;;  %s1864_s0 = inlined_call_operand.vmem [shape: f32[128,8], index: 0, kind: input, shape index: {}]   ;;  %s1865_s1 = inlined_call_operand.vmem [shape: f32[128,8], index: 1, kind: input, shape index: {}]   ;;  %s1866_s2 = inlined_call_operand.vmem [shape: bf16[128,16], index: 2, kind: output, shape index: {0}]   ;;  %s1867_s3 = inlined_call_operand.vmem [shape: f32[128,1], index: 3, kind: output, shape index: {1}]  }
   0x1   :  { %v994_v0 = vld [vmem:[%s1864_s0 + $0x10] sm:$0xff]  ;;  %v13_v1 = vld [vmem:[%s1864_s0] sm:$0xff]  ;;  %v16_v2 = vld [vmem:[%s1864_s0 + $0x18] sm:$0xff] }
   0x2   :  { %v47_v3 = vmul.f32 %v994_v0, %v994_v0  ;;  %v45_v4 = vmul.f32 %v13_v1, %v13_v1  ;;  %v48_v5 = vmul.f32 %v16_v2, %v16_v2  ;;  %v1007_v6 = vld [vmem:[%s1864_s0 + $0x8] sm:$0xff]  ;;  %v1017_v9 = vld [vmem:[%s1864_s0 + $0x20] sm:$0xff]  ;;  %v20_v16 = vld [vmem:[%s1864_s0 + $0x38] sm:$0xff] }
   0x3   :  { %v46_v7 = vmul.f32 %v1007_v6, %v1007_v6  ;;  %v18_v8 = vld [vmem:[%s1864_s0 + $0x28] sm:$0xff]  ;;  %v49_v15 = vmul.f32 %v1017_v9, %v1017_v9  ;;  %v1031_v17 = vld [vmem:[%s1864_s0 + $0x30] sm:$0xff]  ;;  %v52_v20 = vmul.f32 %v20_v16, %v20_v16  ;;  %v1043_v23 = vld [vmem:[%s1864_s0 + $0x40] sm:$0xff] }
   0x4   :  { %v68_v10 = vsel %vm61_vm0, %v47_v3, 0.0  ;;  %v62_v11 = vsel %vm61_vm0, %v45_v4, 0.0  ;;  %v71_v12 = vsel %vm61_vm0, %v48_v5, 0.0  ;;  %v50_v14 = vmul.f32 %v18_v8, %v18_v8  ;;  %v22_v22 = vld [vmem:[%s1864_s0 + $0x48] sm:$0xff]  ;;  %v24_v28 = vld [vmem:[%s1864_s0 + $0x58] sm:$0xff]  ;;  %v1055_v29 = vld [vmem:[%s1864_s0 + $0x50] sm:$0xff] }
   0x5   :  { %69 = vadd.xlane.f32.xlu1 %v68_v10  ;;  %63 = vadd.xlane.f32.xlu0 %v62_v11  ;;  %v65_v13 = vsel %vm61_vm0, %v46_v7, 0.0  ;;  %v74_v19 = vsel %vm61_vm0, %v49_v15, 0.0  ;;  %v51_v21 = vmul.f32 %v1031_v17, %v1031_v17  ;;  %v83_v24 = vsel %vm61_vm0, %v52_v20, 0.0  ;;  %v26_v34 = vld [vmem:[%s1864_s0 + $0x68] sm:$0xff]  ;;  %v1067_v35 = vld [vmem:[%s1864_s0 + $0x60] sm:$0xff]  ;;  %v28_v40 = vld [vmem:[%s1864_s0 + $0x78] sm:$0xff] }
   0x6   :  { %v77_v18 = vsel %vm61_vm0, %v50_v14, 0.0  ;;  %v54_v26 = vmul.f32 %v22_v22, %v22_v22  ;;  %v53_v27 = vmul.f32 %v1043_v23, %v1043_v23  ;;  %v56_v32 = vmul.f32 %v24_v28, %v24_v28  ;;  %1873 = vst [vmem:[#allocation2_spill] sm:$0xff] %v1067_v35  ;;  %v27_v41 = vld [vmem:[%s1864_s0 + $0x70] sm:$0xff]  ;;  %v1084_v46 = vld [vmem:[%s1865_s1 + $0x8] sm:$0xff]  ;;  %v1089_v47 = vld [vmem:[%s1865_s1] sm:$0xff] }
   0x7   :  { %v80_v25 = vsel %vm61_vm0, %v51_v21, 0.0  ;;  %v55_v33 = vmul.f32 %v1055_v29, %v1055_v29  ;;  %v58_v38 = vmul.f32 %v26_v34, %v26_v34  ;;  %v57_v39 = vmul.f32 %v1067_v35, %v1067_v35  ;;  %v1100_v52 = vld [vmem:[%s1865_s1 + $0x18] sm:$0xff]  ;;  %v1105_v53 = vld [vmem:[%s1865_s1 + $0x10] sm:$0xff]  ;;  %v1116_v58 = vld [vmem:[%s1865_s1 + $0x28] sm:$0xff] }
   0x8   :  { %v89_v30 = vsel %vm61_vm0, %v54_v26, 0.0  ;;  %v86_v31 = vsel %vm61_vm0, %v53_v27, 0.0  ;;  %v95_v36 = vsel %vm61_vm0, %v56_v32, 0.0  ;;  %v60_v44 = vmul.f32 %v28_v40, %v28_v40  ;;  %v1121_v59 = vld [vmem:[%s1865_s1 + $0x20] sm:$0xff]  ;;  %v1132_v1 = vld [vmem:[%s1865_s1 + $0x38] sm:$0xff]  ;;  %v1137_v2 = vld [vmem:[%s1865_s1 + $0x30] sm:$0xff] }
   0x9   :  { %72 = vadd.xlane.f32.xlu1 %v71_v12  ;;  %66 = vadd.xlane.f32.xlu0 %v65_v13  ;;  %v92_v37 = vsel %vm61_vm0, %v55_v33, 0.0  ;;  %v101_v42 = vsel %vm61_vm0, %v58_v38, 0.0  ;;  %v98_v43 = vsel %vm61_vm0, %v57_v39, 0.0  ;;  %v59_v45 = vmul.f32 %v27_v41, %v27_v41  ;;  %v1148_v8 = vld [vmem:[%s1865_s1 + $0x48] sm:$0xff]  ;;  %v1153_v10 = vld [vmem:[%s1865_s1 + $0x40] sm:$0xff]  ;;  %v1164_v15 = vld [vmem:[%s1865_s1 + $0x58] sm:$0xff] }
   0xa   :  { %v107_v48 = vsel %vm61_vm0, %v60_v44, 0.0  ;;  %v271_v50 = vmul.f32 %v1084_v46, %v1084_v46  ;;  %v270_v51 = vmul.f32 %v1089_v47, %v1089_v47  ;;  %v273_v56 = vmul.f32 %v1100_v52, %v1100_v52  ;;  %v1169_v16 = vld [vmem:[%s1865_s1 + $0x50] sm:$0xff]  ;;  %v1180_v22 = vld [vmem:[%s1865_s1 + $0x68] sm:$0xff] }
   0xb   :  { %v104_v49 = vsel %vm61_vm0, %v59_v45, 0.0  ;;  %v272_v57 = vmul.f32 %v1105_v53, %v1105_v53  ;;  %v275_v62 = vmul.f32 %v1116_v58, %v1116_v58  ;;  %v274_v63 = vmul.f32 %v1121_v59, %v1121_v59  ;;  %1874 = vst [vmem:[#allocation3_spill] sm:$0xff] %v1180_v22 }
   0xc   :  { %v289_v54 = vsel %vm61_vm0, %v271_v50, 0.0  ;;  %v286_v55 = vsel %vm61_vm0, %v270_v51, 0.0  ;;  %v295_v60 = vsel %vm61_vm0, %v273_v56, 0.0  ;;  %v277_v5 = vmul.f32 %v1132_v1, %v1132_v1 }
   0xd   :  { %78 = vadd.xlane.f32.xlu1 %v77_v18  ;;  %75 = vadd.xlane.f32.xlu0 %v74_v19  ;;  %v292_v61 = vsel %vm61_vm0, %v272_v57, 0.0  ;;  %v301_v3 = vsel %vm61_vm0, %v275_v62, 0.0  ;;  %v298_v4 = vsel %vm61_vm0, %v274_v63, 0.0  ;;  %v276_v7 = vmul.f32 %v1137_v2, %v1137_v2 }
   0xe   :  { %v307_v11 = vsel %vm61_vm0, %v277_v5, 0.0  ;;  %v279_v13 = vmul.f32 %v1148_v8, %v1148_v8  ;;  %v278_v14 = vmul.f32 %v1153_v10, %v1153_v10  ;;  %v281_v20 = vmul.f32 %v1164_v15, %v1164_v15 }
   0xf   :  { %v304_v12 = vsel %vm61_vm0, %v276_v7, 0.0  ;;  %v280_v21 = vmul.f32 %v1169_v16, %v1169_v16  ;;  %v283_v27 = vmul.f32 %v1180_v22, %v1180_v22 }
  0x10   :  { %v313_v18 = vsel %vm61_vm0, %v279_v13, 0.0  ;;  %v310_v19 = vsel %vm61_vm0, %v278_v14, 0.0 }
  0x11   :  { %84 = vadd.xlane.f32.xlu1 %v83_v24  ;;  %81 = vadd.xlane.f32.xlu0 %v80_v25  ;;  %v1185_v24 = vld [vmem:[%s1865_s1 + $0x60] sm:$0xff]  ;;  %v319_v25 = vsel %vm61_vm0, %v281_v20, 0.0  ;;  %v316_v26 = vsel %vm61_vm0, %v280_v21, 0.0  ;;  %v325_v32 = vsel %vm61_vm0, %v283_v27, 0.0 }
  0x12   :  { %1875 = vst [vmem:[#allocation4_spill] sm:$0xff] %v1185_v24  ;;  %v282_v28 = vmul.f32 %v1185_v24, %v1185_v24 }
  0x14   :  { %v322_v33 = vsel %vm61_vm0, %v282_v28, 0.0 }
  0x15   :  { %90 = vadd.xlane.f32.xlu1 %v89_v30  ;;  %87 = vadd.xlane.f32.xlu0 %v86_v31  ;;  %v1196_v30 = vld [vmem:[%s1865_s1 + $0x78] sm:$0xff]  ;;  %v1201_v31 = vld [vmem:[%s1865_s1 + $0x70] sm:$0xff]  ;;  %s970_s1 = smov 8  }
  0x16   :  { %1876 = vst [vmem:[#allocation5_spill] sm:$0xff] %v1196_v30  ;;  %1877 = vst [vmem:[#allocation6_spill] sm:$0xff] %v1201_v31  ;;  %v285_v34 = vmul.f32 %v1196_v30, %v1196_v30 }
  0x19   :  { %96 = vadd.xlane.f32.xlu1 %v95_v36  ;;  %93 = vadd.xlane.f32.xlu0 %v92_v37  ;;  %v284_v36 = vmul.f32 %v1201_v31, %v1201_v31  ;;  %v331_v37 = vsel %vm61_vm0, %v285_v34, 0.0 }
  0x1b   :  { %v328_v38 = vsel %vm61_vm0, %v284_v36, 0.0 }
  0x1d   :  { %102 = vadd.xlane.f32.xlu1 %v101_v42  ;;  %99 = vadd.xlane.f32.xlu0 %v98_v43 }
  0x21   :  { %108 = vadd.xlane.f32.xlu1 %v107_v48  ;;  %105 = vadd.xlane.f32.xlu0 %v104_v49 }
  0x25   :  { %290 = vadd.xlane.f32.xlu1 %v289_v54  ;;  %287 = vadd.xlane.f32.xlu0 %v286_v55 }
  0x29   :  { %296 = vadd.xlane.f32.xlu1 %v295_v60  ;;  %293 = vadd.xlane.f32.xlu0 %v292_v61 }
  0x2d   :  { %302 = vadd.xlane.f32.xlu1 %v301_v3  ;;  %299 = vadd.xlane.f32.xlu0 %v298_v4 }
  0x31   :  { %308 = vadd.xlane.f32.xlu1 %v307_v11  ;;  %305 = vadd.xlane.f32.xlu0 %v304_v12 }
  0x35   :  { %314 = vadd.xlane.f32.xlu1 %v313_v18  ;;  %311 = vadd.xlane.f32.xlu0 %v310_v19 }
  0x39   :  { %320 = vadd.xlane.f32.xlu1 %v319_v25  ;;  %317 = vadd.xlane.f32.xlu0 %v316_v26 }
  0x3d   :  { %326 = vadd.xlane.f32.xlu1 %v325_v32  ;;  %323 = vadd.xlane.f32.xlu0 %v322_v33 }
  0x41   :  { %332 = vadd.xlane.f32.xlu1 %v331_v37  ;;  %329 = vadd.xlane.f32.xlu0 %v328_v38 }
  0x92   :  { %v1211_v39 = vpop.xlane.xlu1 %69  ;;  %v1213_v40 = vpop.xlane.xlu0 %63 }
  0x96   :  { %v1215_v41 = vpop.xlane.xlu1 %72  ;;  %v1217_v42 = vpop.xlane.xlu0 %66 }
  0x9a   :  { %v1219_v43 = vpop.xlane.xlu1 %78  ;;  %v1221_v44 = vpop.xlane.xlu0 %75 }
  0x9e   :  { %v1223_v45 = vpop.xlane.xlu1 %84  ;;  %v1225_v48 = vpop.xlane.xlu0 %81 }
  0xa2   :  { %v1227_v49 = vpop.xlane.xlu1 %90  ;;  %v1229_v50 = vpop.xlane.xlu0 %87 }
  0xa6   :  { %v1231_v51 = vpop.xlane.xlu1 %96  ;;  %v1233_v54 = vpop.xlane.xlu0 %93 }
  0xaa   :  { %v1235_v55 = vpop.xlane.xlu1 %102  ;;  %v1237_v56 = vpop.xlane.xlu0 %99 }
  0xae   :  { %v1239_v57 = vpop.xlane.xlu1 %108  ;;  %v1241_v60 = vpop.xlane.xlu0 %105 }
  0xb2   :  { %v291_v61 = vpop.xlane.xlu1 %290  ;;  %v288_v62 = vpop.xlane.xlu0 %287 }
  0xb3   :  { %833 = vrsqrt.f32 %v291_v61  ;;  %vm343_vm1 = vcmp.eq.f32.partialorder %v291_v61, inf  ;;  %v346_v14 = vand.u32 2147483648, %v291_v61  ;;  %vm345_vm2 = vcmp.eq.f32.partialorder %v291_v61, 0.0 }
  0xb4   :  { %835 = vrsqrt.f32 %v288_v62  ;;  %vm336_vm3 = vcmp.eq.f32.partialorder %v288_v62, inf  ;;  %v339_v25 = vand.u32 2147483648, %v288_v62  ;;  %vm338_vm4 = vcmp.eq.f32.partialorder %v288_v62, 0.0 }
  0xb6   :  { %v297_v63 = vpop.xlane.xlu1 %296  ;;  %v1243_v3 = vpop.xlane.xlu0 %293 }
  0xb7   :  { %837 = vrsqrt.f32 %v297_v63  ;;  %vm357_vm5 = vcmp.eq.f32.partialorder %v297_v63, inf  ;;  %v360_v38 = vand.u32 2147483648, %v297_v63  ;;  %vm359_vm6 = vcmp.eq.f32.partialorder %v297_v63, 0.0 }
  0xb8   :  { %839 = vrsqrt.f32 %v1211_v39  ;;  %vm350_vm7 = vcmp.eq.f32.partialorder %v1243_v3, inf  ;;  %vm352_vm8 = vcmp.eq.f32.partialorder %v1243_v3, 0.0 }
  0xb9   :  { %841 = vrsqrt.f32 %v1213_v40 }
  0xba   :  { %v1247_v4 = vpop.xlane.xlu1 %302  ;;  %843 = vrsqrt.f32 %v1215_v41  ;;  %v1250_v5 = vpop.xlane.xlu0 %299 }
  0xbb   :  { %845 = vrsqrt.f32 %v1217_v42  ;;  %vm371_vm9 = vcmp.eq.f32.partialorder %v1247_v4, inf  ;;  %vm373_vm10 = vcmp.eq.f32.partialorder %v1247_v4, 0.0  ;;  %vm364_vm11 = vcmp.eq.f32.partialorder %v1250_v5, inf }
  0xbc   :  { %847 = vrsqrt.f32 %v1243_v3  ;;  %vm366_vm12 = vcmp.eq.f32.partialorder %v1250_v5, 0.0 }
  0xbd   :  { %849 = vrsqrt.f32 %v1247_v4  ;;  %v834_v11 = vpop.eup %833 }
  0xbe   :  { %v1255_v7 = vpop.xlane.xlu1 %308  ;;  %851 = vrsqrt.f32 %v1221_v44  ;;  %v836_v12 = vpop.eup %835  ;;  %v342_v13 = vmul.f32 %v834_v11, %v291_v61 }
  0xbf   :  { %853 = vrsqrt.f32 %v1225_v48  ;;  %v335_v18 = vmul.f32 %v836_v12, %v288_v62  ;;  %v1260_v19 = vpop.xlane.xlu0 %305  ;;  %vm385_vm13 = vcmp.eq.f32.partialorder %v1255_v7, inf  ;;  %vm387_vm14 = vcmp.eq.f32.partialorder %v1255_v7, 0.0 }
  0xc0   :  { %855 = vrsqrt.f32 %v1250_v5  ;;  %v344_v21 = vsel %vm343_vm1, %v291_v61, %v342_v13  ;;  %vm378_vm15 = vcmp.eq.f32.partialorder %v1260_v19, inf  ;;  %vm380_vm1 = vcmp.eq.f32.partialorder %v1260_v19, 0.0 }
  0xc1   :  { %v838_v20 = vpop.eup %837  ;;  %v347_v27 = vsel %vm345_vm2, %v346_v14, %v344_v21  ;;  %v337_v28 = vsel %vm336_vm3, %v288_v62, %v335_v18  ;;  %857 = vrsqrt.f32 %v1255_v7 }
  0xc2   :  { %v840_v26 = vpop.eup %839  ;;  %v356_v32 = vmul.f32 %v838_v20, %v297_v63  ;;  %v1262_v33 = vpop.xlane.xlu1 %314  ;;  %v447_v36 = vmax.f32 %v347_v27, 1e-12  ;;  %v340_v37 = vsel %vm338_vm4, %v339_v25, %v337_v28 }
  0xc3   :  { %v1264_v34 = vpop.eup %841  ;;  %v446_v12 = vmax.f32 %v340_v37, 1e-12  ;;  %v1269_v20 = vpop.xlane.xlu0 %311  ;;  %vm399_vm2 = vcmp.eq.f32.partialorder %v1262_v33, inf  ;;  %vm401_vm3 = vcmp.eq.f32.partialorder %v1262_v33, 0.0 }
  0xc4   :  { %v1266_v11 = vpop.eup %843  ;;  %v358_v13 = vsel %vm357_vm5, %v297_v63, %v356_v32  ;;  %859 = vrcp.f32 %v447_v36  ;;  %v353_v63 = vand.u32 2147483648, %v1243_v3  ;;  %vm392_vm4 = vcmp.eq.f32.partialorder %v1269_v20, inf }
  0xc5   :  { %v846_v61 = vpop.eup %845  ;;  %v361_v14 = vsel %vm359_vm6, %v360_v38, %v358_v13  ;;  %861 = vrcp.f32 %v446_v12  ;;  %v374_v38 = vand.u32 2147483648, %v1247_v4  ;;  %vm394_vm5 = vcmp.eq.f32.partialorder %v1269_v20, 0.0 }
  0xc6   :  { %v848_v62 = vpop.eup %847  ;;  %v449_v18 = vmax.f32 %v361_v14, 1e-12  ;;  %863 = vrsqrt.f32 %v1260_v19  ;;  %v1279_v32 = vpop.xlane.xlu1 %320  ;;  %vm119_vm6 = vcmp.eq.f32.partialorder %v1217_v42, inf }
  0xc7   :  { %v850_v21 = vpop.eup %849  ;;  %v349_v25 = vmul.f32 %v848_v62, %v1243_v3  ;;  %v416_v22 = vand.u32 2147483648, %v1279_v32 }
  0xc8   :  { %v1274_v27 = vpop.eup %851  ;;  %865 = vrcp.f32 %v449_v18  ;;  %v370_v28 = vmul.f32 %v850_v21, %v1247_v4 }
  0xc9   :  { %v1281_v36 = vpop.eup %853  ;;  %v351_v37 = vsel %vm350_vm7, %v1243_v3, %v349_v25  ;;  %867 = vrsqrt.f32 %v1262_v33  ;;  %v367_v25 = vand.u32 2147483648, %v1250_v5  ;;  %vm413_vm7 = vcmp.eq.f32.partialorder %v1279_v32, inf }
  0xca   :  { %v856_v12 = vpop.eup %855  ;;  %v354_v13 = vsel %vm352_vm8, %v353_v63, %v351_v37  ;;  %v372_v14 = vsel %vm371_vm9, %v1247_v4, %v370_v28  ;;  %869 = vrsqrt.f32 %v1269_v20  ;;  %v1295_v63 = vpop.xlane.xlu0 %317  ;;  %v1300_v37 = vmul.f32 %v840_v26, %v1211_v39 }
  0xcb   :  { %v448_v62 = vmax.f32 %v354_v13, 1e-12  ;;  %v375_v18 = vsel %vm373_vm10, %v374_v38, %v372_v14  ;;  %v363_v21 = vmul.f32 %v856_v12, %v1250_v5  ;;  %871 = vrsqrt.f32 %v1279_v32  ;;  %v858_v28 = vpop.eup %857 }
  0xcc   :  { %873 = vrsqrt.f32 %v1229_v50  ;;  %v451_v3 = vmax.f32 %v375_v18, 1e-12  ;;  %v1303_v38 = vmul.f32 %v846_v61, %v1217_v42  ;;  %v384_v18 = vmul.f32 %v858_v28, %v1255_v7 }
  0xcd   :  { %875 = vrcp.f32 %v448_v62  ;;  %v365_v4 = vsel %vm364_vm11, %v1250_v5, %v363_v21  ;;  %v388_v5 = vand.u32 2147483648, %v1255_v7  ;;  %v381_v21 = vand.u32 2147483648, %v1260_v19 }
  0xce   :  { %877 = vrcp.f32 %v451_v3  ;;  %v368_v12 = vsel %vm366_vm12, %v367_v25, %v365_v4  ;;  %v860_v13 = vpop.eup %859  ;;  %v386_v61 = vsel %vm385_vm13, %v1255_v7, %v384_v18  ;;  %v402_v28 = vand.u32 2147483648, %v1262_v33 }
  0xcf   :  { %v450_v14 = vmax.f32 %v368_v12, 1e-12  ;;  %879 = vrsqrt.f32 %v1295_v63  ;;  %v862_v62 = vpop.eup %861  ;;  %v389_v25 = vsel %vm387_vm14, %v388_v5, %v386_v61  ;;  %v395_v7 = vand.u32 2147483648, %v1269_v20 }
  0xd0   :  { %v864_v26 = vpop.eup %863  ;;  %v453_v30 = vmax.f32 %v389_v25, 1e-12  ;;  %vm415_vm8 = vcmp.eq.f32.partialorder %v1279_v32, 0.0  ;;  %v1339_v24 = vmul.f32 %v862_v62, %v1089_v47  ;;  %vm406_vm9 = vcmp.eq.f32.partialorder %v1295_v63, inf }
  0xd1   :  { %881 = vrcp.f32 %v450_v14  ;;  %v377_v4 = vmul.f32 %v864_v26, %v1260_v19  ;;  %vm408_vm10 = vcmp.eq.f32.partialorder %v1295_v63, 0.0  ;;  %vm126_vm11 = vcmp.eq.f32.partialorder %v1211_v39, inf }
  0xd2   :  { %v866_v3 = vpop.eup %865  ;;  %883 = vrcp.f32 %v453_v30  ;;  %vm128_vm12 = vcmp.eq.f32.partialorder %v1211_v39, 0.0  ;;  %vm112_vm13 = vcmp.eq.f32.partialorder %v1213_v40, inf  ;;  %vm121_vm14 = vcmp.eq.f32.partialorder %v1217_v42, 0.0 }
  0xd3   :  { %v868_v12 = vpop.eup %867  ;;  %v379_v18 = vsel %vm378_vm15, %v1260_v19, %v377_v4  ;;  %vm114_vm15 = vcmp.eq.f32.partialorder %v1213_v40, 0.0 }
  0xd4   :  { %v870_v14 = vpop.eup %869  ;;  %v398_v5 = vmul.f32 %v868_v12, %v1262_v33  ;;  %v382_v61 = vsel %vm380_vm1, %v381_v21, %v379_v18  ;;  %v1350_v18 = vmul.f32 %v866_v3, %v1100_v52  ;;  %vm133_vm1 = vcmp.eq.f32.partialorder %v1215_v41, inf }
  0xd5   :  { %v872_v26 = vpop.eup %871  ;;  %v391_v25 = vmul.f32 %v870_v14, %v1269_v20  ;;  %v452_v35 = vmax.f32 %v382_v61, 1e-12  ;;  %v1347_v14 = vmul.f32 %v860_v13, %v1084_v46 }
  0xd6   :  { %v1332_v31 = vpop.eup %873  ;;  %v400_v4 = vsel %vm399_vm2, %v1262_v33, %v398_v5  ;;  %v412_v12 = vmul.f32 %v872_v26, %v1279_v32  ;;  %vm140_vm2 = vcmp.eq.f32.partialorder %v1221_v44, inf }
  0xd7   :  { %v876_v30 = vpop.eup %875  ;;  %v403_v19 = vsel %vm401_vm3, %v402_v28, %v400_v4  ;;  %v393_v21 = vsel %vm392_vm4, %v1269_v20, %v391_v25  ;;  %885 = vrcp.f32 %v452_v35  ;;  %v793_v46 = vpack.i.bf16 %v1347_v14, %v1339_v24  ;;  %v1384_v4 = vpop.xlane.xlu0 %323 }
  0xd8   :  { %v878_v5 = vpop.eup %877  ;;  %v455_v26 = vmax.f32 %v403_v19, 1e-12  ;;  %v396_v47 = vsel %vm394_vm5, %v395_v7, %v393_v21  ;;  %v414_v33 = vsel %vm413_vm7, %v1279_v32, %v412_v12  ;;  %v1362_v52 = vmul.f32 %v876_v30, %v1105_v53 }
  0xd9   :  { %v880_v62 = vpop.eup %879  ;;  %v454_v28 = vmax.f32 %v396_v47, 1e-12  ;;  %v417_v61 = vsel %vm415_vm8, %v416_v22, %v414_v33  ;;  %v1366_v13 = vmul.f32 %v878_v5, %v1116_v58  ;;  %v409_v32 = vand.u32 2147483648, %v1295_v63  ;;  %794 = vrot.lane.b32.xlu0 %v793_v46, %s970_s1 }
  0xda   :  { %887 = vrcp.f32 %v455_v26  ;;  %v457_v35 = vmax.f32 %v417_v61, 1e-12  ;;  %v405_v20 = vmul.f32 %v880_v62, %v1295_v63  ;;  %v798_v53 = vpack.i.bf16 %v1350_v18, %v1362_v52 }
  0xdb   :  { %v882_v3 = vpop.eup %881  ;;  %889 = vrcp.f32 %v454_v28  ;;  %v120_v7 = vsel %vm119_vm6, %v1217_v42, %v1303_v38  ;;  %v122_v12 = vand.u32 2147483648, %v1217_v42  ;;  %v129_v19 = vand.u32 2147483648, %v1211_v39  ;;  %v1415_v28 = vpop.xlane.xlu0 %329 }
  0xdc   :  { %891 = vrcp.f32 %v457_v35  ;;  %v407_v22 = vsel %vm406_vm9, %v1295_v63, %v405_v20  ;;  %v1376_v58 = vmul.f32 %v882_v3, %v1121_v59  ;;  %799 = vrot.lane.b32.xlu1 %v798_v53, %s970_s1  ;;  %v884_v30 = vpop.eup %883  ;;  %v127_v38 = vsel %vm126_vm11, %v1211_v39, %v1300_v37 }
  0xdd   :  { %v410_v25 = vsel %vm408_vm10, %v409_v32, %v407_v22  ;;  %893 = vrsqrt.f32 %v1219_v43  ;;  %v111_v21 = vmul.f32 %v1264_v34, %v1213_v40  ;;  %v123_v5 = vsel %vm121_vm14, %v122_v12, %v120_v7 }
  0xde   :  { %v456_v59 = vmax.f32 %v410_v25, 1e-12  ;;  %v803_v63 = vpack.i.bf16 %v1366_v13, %v1376_v58  ;;  %895 = vrsqrt.f32 %v1233_v54  ;;  %v139_v26 = vmul.f32 %v1274_v27, %v1221_v44 }
  0xdf   :  { %v1405_v42 = vmul.f32 %v884_v30, %v1132_v1  ;;  %v115_v37 = vand.u32 2147483648, %v1213_v40  ;;  %v136_v34 = vand.u32 2147483648, %v1215_v41  ;;  %v130_v33 = vsel %vm128_vm12, %v129_v19, %v127_v38 }
  0xe0   :  { %897 = vrcp.f32 %v456_v59  ;;  %804 = vrot.lane.b32.xlu0 %v803_v63, %s970_s1  ;;  %v132_v27 = vmul.f32 %v1266_v11, %v1215_v41  ;;  %v223_v62 = vmax.f32 %v123_v5, 1e-12  ;;  %v113_v46 = vsel %vm112_vm13, %v1213_v40, %v111_v21 }
  0xe1   :  { %899 = vrsqrt.f32 %v1223_v45  ;;  %v886_v47 = vpop.eup %885  ;;  %v153_v39 = vmul.f32 %v1281_v36, %v1225_v48  ;;  %v141_v11 = vsel %vm140_vm2, %v1221_v44, %v139_v26  ;;  %vm142_vm3 = vcmp.eq.f32.partialorder %v1221_v44, 0.0 }
  0xe2   :  { %901 = vrsqrt.f32 %v1384_v4  ;;  %v1418_v1 = vmul.f32 %v886_v47, %v1137_v2  ;;  %v224_v32 = vmax.f32 %v130_v33, 1e-12  ;;  %v143_v53 = vand.u32 2147483648, %v1221_v44 }
  0xe3   :  { %903 = vrsqrt.f32 %v1237_v56  ;;  %v116_v22 = vsel %vm114_vm15, %v115_v37, %v113_v46  ;;  %v134_v7 = vsel %vm133_vm1, %v1215_v41, %v132_v27  ;;  %vm154_vm4 = vcmp.eq.f32.partialorder %v1225_v48, inf }
  0xe4   :  { %v888_v61 = vpop.eup %887  ;;  %v808_v2 = vpack.i.bf16 %v1405_v42, %v1418_v1  ;;  %905 = vrsqrt.f32 %v1415_v28  ;;  %v144_v25 = vsel %vm142_vm3, %v143_v53, %v141_v11  ;;  %v155_v44 = vsel %vm154_vm4, %v1225_v48, %v153_v39  ;;  %v1478_v39 = vpop.xlane.xlu1 %326 }
  0xe5   :  { %v890_v35 = vpop.eup %889  ;;  %v1432_v20 = vmul.f32 %v888_v61, %v1148_v8  ;;  %907 = vrcp.f32 %v223_v62  ;;  %vm135_vm5 = vcmp.eq.f32.partialorder %v1215_v41, 0.0  ;;  %v157_v12 = vand.u32 2147483648, %v1225_v48 }
  0xe6   :  { %v892_v3 = vpop.eup %891  ;;  %v1437_v36 = vmul.f32 %v890_v35, %v1153_v10  ;;  %809 = vrot.lane.b32.xlu1 %v808_v2, %s970_s1  ;;  %909 = vrsqrt.f32 %v1241_v60  ;;  %v167_v59 = vmul.f32 %v1332_v31, %v1229_v50  ;;  %v222_v19 = vmax.f32 %v116_v22, 1e-12 }
  0xe7   :  { %v894_v8 = vpop.eup %893  ;;  %v1455_v63 = vmul.f32 %v892_v3, %v1164_v15  ;;  %911 = vrcp.f32 %v224_v32  ;;  %v1457_v38 = vsel %vm135_vm5, %v136_v34, %v134_v7  ;;  %vm156_vm6 = vcmp.eq.f32.partialorder %v1225_v48, 0.0 }
  0xe8   :  { %v813_v10 = vpack.i.bf16 %v1432_v20, %v1437_v36  ;;  %v896_v40 = vpop.eup %895  ;;  %v146_v5 = vmul.f32 %v894_v8, %v1219_v43  ;;  %v226_v26 = vmax.f32 %v144_v25, 1e-12  ;;  %v158_v41 = vsel %vm156_vm6, %v157_v12, %v155_v44 }
  0xe9   :  { %vm147_vm7 = vcmp.eq.f32.partialorder %v1219_v43, inf  ;;  %v150_v15 = vand.u32 2147483648, %v1219_v43  ;;  %v164_v37 = vand.u32 2147483648, %v1223_v45  ;;  %vm168_vm8 = vcmp.eq.f32.partialorder %v1229_v50, inf }
  0xea   :  { %v898_v30 = vpop.eup %897  ;;  %814 = vrot.lane.b32.xlu1 %v813_v10, %s970_s1  ;;  %913 = vrsqrt.f32 %v1227_v49  ;;  %v169_v48 = vsel %vm168_vm8, %v1229_v50, %v167_v59  ;;  %v181_v34 = vmul.f32 %v896_v40, %v1233_v54  ;;  %v225_v27 = vmax.f32 %v1457_v38, 1e-12 }
  0xeb   :  { %v900_v21 = vpop.eup %899  ;;  %v1463_v47 = vmul.f32 %v898_v30, %v1169_v16  ;;  %915 = vrcp.f32 %v222_v19  ;;  %v228_v62 = vmax.f32 %v158_v41, 1e-12  ;;  %v171_v61 = vand.u32 2147483648, %v1229_v50 }
  0xec   :  { %v902_v31 = vpop.eup %901  ;;  %v148_v46 = vsel %vm147_vm7, %v1219_v43, %v146_v5  ;;  %917 = vrcp.f32 %v226_v26  ;;  %vm170_vm9 = vcmp.eq.f32.partialorder %v1229_v50, 0.0  ;;  %vm149_vm10 = vcmp.eq.f32.partialorder %v1219_v43, 0.0 }
  0xed   :  { %v818_v33 = vpack.i.bf16 %v1455_v63, %v1463_v47  ;;  %v904_v16 = vpop.eup %903  ;;  %v419_v35 = vmul.f32 %v902_v31, %v1384_v4  ;;  %v172_v2 = vsel %vm170_vm9, %v171_v61, %v169_v48  ;;  %919 = vrsqrt.f32 %v1231_v51 }
  0xee   :  { %v906_v11 = vpop.eup %905  ;;  %vm182_vm11 = vcmp.eq.f32.partialorder %v1233_v54, inf  ;;  %vm420_vm12 = vcmp.eq.f32.partialorder %v1384_v4, inf  ;;  %v160_v32 = vmul.f32 %v900_v21, %v1223_v45  ;;  %921 = vrsqrt.f32 %v1235_v55 }
  0xef   :  { %819 = vrot.lane.b32.xlu1 %v818_v33, %s970_s1  ;;  %v908_v3 = vpop.eup %907  ;;  %v183_v50 = vsel %vm182_vm11, %v1233_v54, %v181_v34  ;;  %v195_v53 = vmul.f32 %v904_v16, %v1237_v56  ;;  %vm161_vm13 = vcmp.eq.f32.partialorder %v1223_v45, inf  ;;  %923 = vrcp.f32 %v228_v62 }
  0xf0   :  { %v910_v22 = vpop.eup %909  ;;  %vm184_vm14 = vcmp.eq.f32.partialorder %v1233_v54, 0.0  ;;  %v185_v7 = vand.u32 2147483648, %v1233_v54  ;;  %v423_v8 = vand.u32 2147483648, %v1384_v4  ;;  %v230_v25 = vmax.f32 %v172_v2, 1e-12 }
  0xf1   :  { %v421_v44 = vsel %vm420_vm12, %v1384_v4, %v419_v35  ;;  %vm422_vm15 = vcmp.eq.f32.partialorder %v1384_v4, 0.0  ;;  %v433_v10 = vmul.f32 %v906_v11, %v1415_v28  ;;  %v912_v40 = vpop.eup %911  ;;  %vm196_vm1 = vcmp.eq.f32.partialorder %v1237_v56, inf  ;;  %v1507_v4 = vpop.xlane.xlu1 %332 }
  0xf2   :  { %v186_v12 = vsel %vm184_vm14, %v185_v7, %v183_v50  ;;  %vm434_vm2 = vcmp.eq.f32.partialorder %v1415_v28, inf  ;;  %v1500_v59 = vmul.f32 %v908_v3, %v1007_v6  ;;  %vm163_vm3 = vcmp.eq.f32.partialorder %v1223_v45, 0.0 }
  0xf3   :  { %v197_v54 = vsel %vm196_vm1, %v1237_v56, %v195_v53  ;;  %vm198_vm4 = vcmp.eq.f32.partialorder %v1237_v56, 0.0  ;;  %v209_v30 = vmul.f32 %v910_v22, %v1241_v60  ;;  %925 = vrsqrt.f32 %v1478_v39 }
  0xf4   :  { %v199_v19 = vand.u32 2147483648, %v1237_v56  ;;  %v424_v21 = vsel %vm422_vm15, %v423_v8, %v421_v44  ;;  %v437_v5 = vand.u32 2147483648, %v1415_v28  ;;  %v656_v6 = vsub.f32 %v1500_v59, %v1347_v14  ;;  %v914_v26 = vpop.eup %913 }
  0xf5   :  { %927 = vrcp.f32 %v230_v25  ;;  %v232_v41 = vmax.f32 %v186_v12, 1e-12  ;;  %v435_v31 = vsel %vm434_vm2, %v1415_v28, %v433_v10  ;;  %vm436_vm5 = vcmp.eq.f32.partialorder %v1415_v28, 0.0  ;;  %v1515_v48 = vpop.eup %915 }
  0xf6   :  { %vm175_vm6 = vcmp.eq.f32.partialorder %v1227_v49, inf  ;;  %v200_v34 = vsel %vm198_vm4, %v199_v19, %v197_v54  ;;  %vm210_vm7 = vcmp.eq.f32.partialorder %v1241_v60, inf  ;;  %929 = vrsqrt.f32 %v1507_v4  ;;  %v918_v14 = vpop.eup %917 }
  0xf7   :  { %v1521_v56 = vmul.f32 %v912_v40, %v994_v0  ;;  %v151_v33 = vsel %vm149_vm10, %v150_v15, %v148_v46  ;;  %931 = vrsqrt.f32 %v1239_v57  ;;  %v211_v28 = vsel %vm210_vm7, %v1241_v60, %v209_v30  ;;  %v920_v62 = vpop.eup %919 }
  0xf8   :  { %v458_v16 = vmax.f32 %v424_v21, 1e-12  ;;  %v213_v61 = vand.u32 2147483648, %v1241_v60  ;;  %v438_v35 = vsel %vm436_vm5, %v437_v5, %v435_v31  ;;  %v672_v11 = vmul.f32 %v656_v6, %v656_v6  ;;  %v922_v2 = vpop.eup %921 }
  0xf9   :  { %v657_v0 = vsub.f32 %v1521_v56, %v1362_v52  ;;  %v162_v3 = vsel %vm161_vm13, %v1223_v45, %v160_v32  ;;  %vm177_vm8 = vcmp.eq.f32.partialorder %v1227_v49, 0.0  ;;  %933 = vrcp.f32 %v232_v41  ;;  %v924_v15 = vpop.eup %923 }
  0xfa   :  { %v234_v43 = vmax.f32 %v200_v34, 1e-12  ;;  %vm212_vm9 = vcmp.eq.f32.partialorder %v1241_v60, 0.0  ;;  %935 = vrcp.f32 %v225_v27  ;;  %v227_v46 = vmax.f32 %v151_v33, 1e-12 }
  0xfb   :  { %v214_v50 = vsel %vm212_vm9, %v213_v61, %v211_v28  ;;  %v1540_v53 = vmul.f32 %v918_v14, %v1017_v9  ;;  %v174_v52 = vmul.f32 %v914_v26, %v1227_v49  ;;  %v178_v22 = vand.u32 2147483648, %v1227_v49 }
  0xfc   :  { %937 = vrcp.f32 %v458_v16  ;;  %v460_v32 = vmax.f32 %v438_v35, 1e-12  ;;  %v165_v60 = vsel %vm163_vm3, %v164_v37, %v162_v3  ;;  %v690_v7 = vsel %vm61_vm0, %v672_v11, 0.0  ;;  %v961_v35 = vld [vmem:[%s1864_s0] sm:$0xff] }
  0xfd   :  { %v673_v38 = vmul.f32 %v657_v0, %v657_v0  ;;  %v659_v27 = vsub.f32 %v1540_v53, %v1376_v58  ;;  %v926_v8 = vpop.eup %925  ;;  %vm189_vm10 = vcmp.eq.f32.partialorder %v1231_v51, inf  ;;  %vm191_vm11 = vcmp.eq.f32.partialorder %v1231_v51, 0.0 }
  0xfe   :  { %939 = vrcp.f32 %v234_v43  ;;  %v236_v9 = vmax.f32 %v214_v50, 1e-12  ;;  %v188_v25 = vmul.f32 %v920_v62, %v1231_v51  ;;  %v192_v45 = vand.u32 2147483648, %v1231_v51 }
  0xff   :  { %691 = vadd.xlane.f32.xlu0 %v690_v7  ;;  %941 = vrcp.f32 %v227_v46  ;;  %v1556_v37 = vmul.f32 %v924_v15, %v1031_v17  ;;  %v928_v44 = vpop.eup %927  ;;  %v229_v10 = vmax.f32 %v165_v60, 1e-12  ;;  %v176_v58 = vsel %vm175_vm6, %v1227_v49, %v174_v52 }
 0x100   :  { %vm203_vm12 = vcmp.eq.f32.partialorder %v1235_v55, inf  ;;  %943 = vrcp.f32 %v460_v32  ;;  %v930_v40 = vpop.eup %929  ;;  %v426_v12 = vmul.f32 %v926_v8, %v1478_v39  ;;  %v693_v54 = vsel %vm61_vm0, %v673_v38, 0.0  ;;  %v1879_v8 = vld [vmem:[#allocation2_spill] sm:$0xff] }
 0x101   :  { %v675_v30 = vmul.f32 %v659_v27, %v659_v27  ;;  %v661_v19 = vsub.f32 %v1556_v37, %v1418_v1  ;;  %v932_v17 = vpop.eup %931  ;;  %vm205_vm13 = vcmp.eq.f32.partialorder %v1235_v55, 0.0  ;;  %v206_v21 = vand.u32 2147483648, %v1235_v55 }
 0x102   :  { %945 = vrcp.f32 %v236_v9  ;;  %vm427_vm14 = vcmp.eq.f32.partialorder %v1478_v39, inf  ;;  %v179_v5 = vsel %vm177_vm8, %v178_v22, %v176_v58  ;;  %v190_v6 = vsel %vm189_vm10, %v1231_v51, %v188_v25  ;;  %v1878_v22 = vld [vmem:[#allocation4_spill] sm:$0xff] }
 0x103   :  { %694 = vadd.xlane.f32.xlu0 %v693_v54  ;;  %v202_v26 = vmul.f32 %v922_v2, %v1235_v55  ;;  %v1576_v1 = vmul.f32 %v928_v44, %v1043_v23  ;;  %v934_v41 = vpop.eup %933  ;;  %vm429_vm15 = vcmp.eq.f32.partialorder %v1478_v39, 0.0  ;;  %v430_v31 = vand.u32 2147483648, %v1478_v39  ;;  %v1880_v54 = vld [vmem:[#allocation6_spill] sm:$0xff] }
 0x104   :  { %v440_v34 = vmul.f32 %v930_v40, %v1507_v4  ;;  %vm441_vm1 = vcmp.eq.f32.partialorder %v1507_v4, inf  ;;  %v936_v49 = vpop.eup %935  ;;  %v428_v14 = vsel %vm427_vm14, %v1478_v39, %v426_v12  ;;  %v699_v33 = vsel %vm61_vm0, %v675_v30, 0.0 }
 0x105   :  { %v677_v28 = vmul.f32 %v661_v19, %v661_v19  ;;  %v663_v16 = vsub.f32 %v1576_v1, %v1437_v36  ;;  %947 = vrcp.f32 %v229_v10  ;;  %v231_v62 = vmax.f32 %v179_v5, 1e-12 }
 0x106   :  { %v938_v23 = vpop.eup %937  ;;  %v193_v61 = vsel %vm191_vm11, %v192_v45, %v190_v6  ;;  %v1592_v11 = vmul.f32 %v961_v35, %v1515_v48  ;;  %v204_v0 = vsel %vm203_vm12, %v1235_v55, %v202_v26  ;;  %v216_v36 = vmul.f32 %v932_v17, %v1239_v57 }
 0x107   :  { %700 = vadd.xlane.f32.xlu0 %v699_v33  ;;  %vm443_vm2 = vcmp.eq.f32.partialorder %v1507_v4, 0.0  ;;  %v1600_v2 = vmul.f32 %v934_v41, %v1055_v29  ;;  %v431_v3 = vsel %vm429_vm15, %v430_v31, %v428_v14  ;;  %v442_v48 = vsel %vm441_vm1, %v1507_v4, %v440_v34 }
 0x108   :  { %v940_v51 = vpop.eup %939  ;;  %v444_v43 = vand.u32 2147483648, %v1507_v4  ;;  %v655_v15 = vsub.f32 %v1592_v11, %v1339_v24  ;;  %v705_v50 = vsel %vm61_vm0, %v677_v28, 0.0  ;;  %v679_v52 = vmul.f32 %v663_v16, %v663_v16  ;;  %v962_v24 = vld [vmem:[%s1864_s0 + $0x18] sm:$0xff]  ;;  %v963_v4 = vld [vmem:[%s1864_s0 + $0x28] sm:$0xff] }
 0x109   :  { %v942_v46 = vpop.eup %941  ;;  %v665_v29 = vsub.f32 %v1600_v2, %v1463_v47  ;;  %v1614_v32 = vmul.f32 %v938_v23, %v1878_v22  ;;  %949 = vrcp.f32 %v231_v62  ;;  %v233_v60 = vmax.f32 %v193_v61, 1e-12  ;;  %v965_v28 = vld [vmem:[%s1864_s0 + $0x38] sm:$0xff] }
 0x10a   :  { %v944_v39 = vpop.eup %943  ;;  %vm217_vm3 = vcmp.eq.f32.partialorder %v1239_v57, inf  ;;  %v1620_v7 = vmul.f32 %v962_v24, %v936_v49  ;;  %v207_v38 = vsel %vm205_vm13, %v206_v21, %v204_v0  ;;  %v220_v27 = vand.u32 2147483648, %v1239_v57  ;;  %v964_v21 = vld [vmem:[%s1864_s0 + $0x70] sm:$0xff]  ;;  %v1881_v24 = vld [vmem:[#allocation3_spill] sm:$0xff] }
 0x10b   :  { %706 = vadd.xlane.f32.xlu0 %v705_v50  ;;  %v218_v47 = vsel %vm217_vm3, %v1239_v57, %v216_v36  ;;  %v1627_v9 = vmul.f32 %v940_v51, %v1879_v8  ;;  %v459_v45 = vmax.f32 %v431_v3, 1e-12  ;;  %v445_v44 = vsel %vm443_vm2, %v444_v43, %v442_v48  ;;  %v966_v36 = vld [vmem:[%s1864_s0 + $0x48] sm:$0xff] }
 0x10c   :  { %v946_v25 = vpop.eup %945  ;;  %v671_v10 = vmul.f32 %v655_v15, %v655_v15  ;;  %v658_v58 = vsub.f32 %v1620_v7, %v1350_v18  ;;  %v711_v40 = vsel %vm61_vm0, %v679_v52, 0.0  ;;  %v681_v55 = vmul.f32 %v665_v29, %v665_v29 }
 0x10d   :  { %v667_v12 = vsub.f32 %v1627_v9, %v1614_v32  ;;  %v1637_v30 = vmul.f32 %v944_v39, %v1880_v54  ;;  %951 = vrcp.f32 %v233_v60  ;;  %v235_v19 = vmax.f32 %v207_v38, 1e-12 }
 0x10e   :  { %vm219_vm4 = vcmp.eq.f32.partialorder %v1239_v57, 0.0  ;;  %v1643_v17 = vmul.f32 %v963_v4, %v942_v46  ;;  %v1648_v5 = vmul.f32 %v964_v21, %v946_v25  ;;  %953 = vrcp.f32 %v459_v45 }
 0x10f   :  { %712 = vadd.xlane.f32.xlu0 %v711_v40  ;;  %v221_v18 = vsel %vm219_vm4, %v220_v27, %v218_v47  ;;  %v948_v6 = vpop.eup %947  ;;  %v461_v26 = vmax.f32 %v445_v44, 1e-12  ;;  %v674_v41 = vmul.f32 %v658_v58, %v658_v58  ;;  %v687_v31 = vsel %vm61_vm0, %v671_v10, 0.0  ;;  %v1882_v10 = vld [vmem:[#allocation5_spill] sm:$0xff] }
 0x110   :  { %v660_v57 = vsub.f32 %v1643_v17, %v1366_v13  ;;  %v717_v34 = vsel %vm61_vm0, %v681_v55, 0.0  ;;  %v683_v49 = vmul.f32 %v667_v12, %v667_v12  ;;  %v669_v14 = vsub.f32 %v1648_v5, %v1637_v30 }
 0x111   :  { %955 = vrcp.f32 %v235_v19  ;;  %v237_v33 = vmax.f32 %v221_v18, 1e-12  ;;  %v1659_v16 = vmul.f32 %v965_v28, %v948_v6  ;;  %v696_v13 = vsel %vm61_vm0, %v674_v41, 0.0 }
 0x112   :  { %957 = vrcp.f32 %v461_v26  ;;  %v723_v62 = vsel %vm61_vm0, %v683_v49, 0.0  ;;  %v676_v61 = vmul.f32 %v660_v57, %v660_v57  ;;  %v685_v35 = vmul.f32 %v669_v14, %v669_v14 }
 0x113   :  { %688 = vadd.xlane.f32.xlu1 %v687_v31  ;;  %718 = vadd.xlane.f32.xlu0 %v717_v34  ;;  %v950_v23 = vpop.eup %949  ;;  %v662_v0 = vsub.f32 %v1659_v16, %v1405_v42  ;;  %959 = vrcp.f32 %v237_v33  ;;  %v967_v42 = vld [vmem:[%s1864_s0 + $0x58] sm:$0xff]  ;;  %vm638_vm5 = vcmask 125952   ;;  %vm735_vm6 = vcmask 7168  }
 0x114   :  { %v1668_v51 = vmul.f32 %v966_v36, %v950_v23  ;;  %v702_v48 = vsel %vm61_vm0, %v676_v61, 0.0  ;;  %v729_v43 = vsel %vm61_vm0, %v685_v35, 0.0 }
 0x115   :  { %v678_v15 = vmul.f32 %v662_v0, %v662_v0 }
 0x116   :  { %v664_v46 = vsub.f32 %v1668_v51, %v1432_v20  ;;  %v968_v20 = vld [vmem:[%s1864_s0 + $0x68] sm:$0xff] }
 0x117   :  { %697 = vadd.xlane.f32.xlu1 %v696_v13  ;;  %724 = vadd.xlane.f32.xlu0 %v723_v62  ;;  %v952_v3 = vpop.eup %951  ;;  %v708_v22 = vsel %vm61_vm0, %v678_v15, 0.0 }
 0x118   :  { %v954_v50 = vpop.eup %953  ;;  %v1677_v52 = vmul.f32 %v967_v42, %v952_v3  ;;  %v680_v39 = vmul.f32 %v664_v46, %v664_v46 }
 0x119   :  { %v489_v38 = vmul.f32 %v954_v50, %v1881_v24 }
 0x11a   :  { %v666_v60 = vsub.f32 %v1677_v52, %v1455_v63  ;;  %v714_v25 = vsel %vm61_vm0, %v680_v39, 0.0  ;;  %v969_v63 = vld [vmem:[%s1864_s0 + $0x78] sm:$0xff] }
 0x11b   :  { %703 = vadd.xlane.f32.xlu1 %v702_v48  ;;  %730 = vadd.xlane.f32.xlu0 %v729_v43  ;;  %v956_v29 = vpop.eup %955  ;;  %v823_v21 = vpack.i.bf16 %v489_v38, %v1614_v32 }
 0x11c   :  { %v958_v47 = vpop.eup %957  ;;  %v1686_v27 = vmul.f32 %v968_v20, %v956_v29  ;;  %v682_v45 = vmul.f32 %v666_v60, %v666_v60 }
 0x11d   :  { %v960_v8 = vpop.eup %959  ;;  %v493_v58 = vmul.f32 %v958_v47, %v1882_v10 }
 0x11e   :  { %v668_v44 = vsub.f32 %v1686_v27, %v489_v38  ;;  %v1694_v40 = vmul.f32 %v969_v63, %v960_v8  ;;  %v720_v55 = vsel %vm61_vm0, %v682_v45, 0.0 }
 0x11f   :  { %709 = vadd.xlane.f32.xlu1 %v708_v22  ;;  %v828_v6 = vpack.i.bf16 %v493_v58, %v1637_v30 }
 0x120   :  { %v684_v12 = vmul.f32 %v668_v44, %v668_v44  ;;  %v670_v54 = vsub.f32 %v1694_v40, %v493_v58 }
 0x122   :  { %v726_v19 = vsel %vm61_vm0, %v684_v12, 0.0  ;;  %v686_v4 = vmul.f32 %v670_v54, %v670_v54 }
 0x123   :  { %715 = vadd.xlane.f32.xlu1 %v714_v25 }
 0x124   :  { %v732_v18 = vsel %vm61_vm0, %v686_v4, 0.0 }
 0x127   :  { %721 = vadd.xlane.f32.xlu1 %v720_v55 }
 0x12b   :  { %727 = vadd.xlane.f32.xlu1 %v726_v19 }
 0x12f   :  { %733 = vadd.xlane.f32.xlu1 %v732_v18 }
 0x131   :  { %824 = vrot.lane.b32.xlu0 %v823_v21, %s970_s1 }
 0x140   :  { %829 = vrot.lane.b32.xlu1 %v828_v6, %s970_s1 }
 0x14b   :  { %v795_v26 = vpop.permute.xlu0 %794 }
 0x14c   :  { %v797_v41 = vunpack.i.h.bf16 %v795_v26  ;;  %v796_v57 = vunpack.i.l.bf16 %v795_v26 }
 0x14e   :  { %v800_v31 = vpop.permute.xlu1 %799  ;;  %v559_v34 = vsel %vm61_vm0, %v1500_v59, %v797_v41  ;;  %v558_v49 = vsel %vm61_vm0, %v1592_v11, %v796_v57 }
 0x14f   :  { %v802_v14 = vunpack.i.h.bf16 %v800_v31  ;;  %v801_v33 = vunpack.i.l.bf16 %v800_v31  ;;  %v777_v32 = vpack.c.bf16 %v559_v34, %v559_v34  ;;  %v776_v28 = vpack.c.bf16 %v558_v49, %v558_v49 }
 0x151   :  { %v561_v30 = vsel %vm61_vm0, %v1620_v7, %v802_v14  ;;  %v560_v23 = vsel %vm61_vm0, %v1521_v56, %v801_v33  ;;  %640 = vst.msk [vmem:[%s1866_s2 + $0x4] sm:$0xf] %vm638_vm5, %v777_v32  ;;  %639 = vst.msk [vmem:[%s1866_s2] sm:$0xf] %vm638_vm5, %v776_v28 }
 0x152   :  { %v805_v13 = vpop.permute.xlu0 %804  ;;  %v779_v59 = vpack.c.bf16 %v561_v30, %v561_v30  ;;  %v778_v11 = vpack.c.bf16 %v560_v23, %v560_v23 }
 0x153   :  { %v807_v62 = vunpack.i.h.bf16 %v805_v13  ;;  %v806_v61 = vunpack.i.l.bf16 %v805_v13 }
 0x154   :  { %642 = vst.msk [vmem:[%s1866_s2 + $0xc] sm:$0xf] %vm638_vm5, %v779_v59  ;;  %641 = vst.msk [vmem:[%s1866_s2 + $0x8] sm:$0xf] %vm638_vm5, %v778_v11 }
 0x155   :  { %v563_v56 = vsel %vm61_vm0, %v1643_v17, %v807_v62  ;;  %v562_v7 = vsel %vm61_vm0, %v1540_v53, %v806_v61 }
 0x156   :  { %v781_v35 = vpack.c.bf16 %v563_v56, %v563_v56  ;;  %v780_v0 = vpack.c.bf16 %v562_v7, %v562_v7 }
 0x158   :  { %644 = vst.msk [vmem:[%s1866_s2 + $0x14] sm:$0xf] %vm638_vm5, %v781_v35  ;;  %643 = vst.msk [vmem:[%s1866_s2 + $0x10] sm:$0xf] %vm638_vm5, %v780_v0  ;;  %v810_v36 = vpop.permute.xlu1 %809 }
 0x159   :  { %v812_v3 = vunpack.i.h.bf16 %v810_v36  ;;  %v811_v48 = vunpack.i.l.bf16 %v810_v36 }
 0x15b   :  { %v565_v17 = vsel %vm61_vm0, %v1659_v16, %v812_v3  ;;  %v564_v53 = vsel %vm61_vm0, %v1556_v37, %v811_v48 }
 0x15c   :  { %v783_v43 = vpack.c.bf16 %v565_v17, %v565_v17  ;;  %v782_v15 = vpack.c.bf16 %v564_v53, %v564_v53  ;;  %v815_v46 = vpop.permute.xlu1 %814 }
 0x15d   :  { %v817_v50 = vunpack.i.h.bf16 %v815_v46  ;;  %v816_v42 = vunpack.i.l.bf16 %v815_v46 }
 0x15e   :  { %646 = vst.msk [vmem:[%s1866_s2 + $0x1c] sm:$0xf] %vm638_vm5, %v783_v43  ;;  %645 = vst.msk [vmem:[%s1866_s2 + $0x18] sm:$0xf] %vm638_vm5, %v782_v15 }
 0x15f   :  { %v567_v16 = vsel %vm61_vm0, %v1668_v51, %v817_v50  ;;  %v566_v37 = vsel %vm61_vm0, %v1576_v1, %v816_v42 }
 0x160   :  { %v785_v29 = vpack.c.bf16 %v567_v16, %v567_v16  ;;  %v784_v22 = vpack.c.bf16 %v566_v37, %v566_v37 }
 0x161   :  { %v820_v39 = vpop.permute.xlu1 %819 }
 0x162   :  { %v822_v60 = vunpack.i.h.bf16 %v820_v39  ;;  %v821_v24 = vunpack.i.l.bf16 %v820_v39  ;;  %648 = vst.msk [vmem:[%s1866_s2 + $0x24] sm:$0xf] %vm638_vm5, %v785_v29  ;;  %647 = vst.msk [vmem:[%s1866_s2 + $0x20] sm:$0xf] %vm638_vm5, %v784_v22 }
 0x164   :  { %v569_v51 = vsel %vm61_vm0, %v1677_v52, %v822_v60  ;;  %v568_v1 = vsel %vm61_vm0, %v1600_v2, %v821_v24 }
 0x165   :  { %v787_v38 = vpack.c.bf16 %v569_v51, %v569_v51  ;;  %v786_v47 = vpack.c.bf16 %v568_v1, %v568_v1 }
 0x167   :  { %650 = vst.msk [vmem:[%s1866_s2 + $0x2c] sm:$0xf] %vm638_vm5, %v787_v38  ;;  %649 = vst.msk [vmem:[%s1866_s2 + $0x28] sm:$0xf] %vm638_vm5, %v786_v47 }
 0x18c   :  { %v692_v20 = vpop.xlane.xlu0 %691 }
 0x18d   :  { %737 = vst.msk [vmem:[%s1867_s3 + $0x8] sm:$0xff] %vm735_vm6, %v692_v20 }
 0x190   :  { %v695_v2 = vpop.xlane.xlu0 %694 }
 0x191   :  { %738 = vst.msk [vmem:[%s1867_s3 + $0x10] sm:$0xff] %vm735_vm6, %v695_v2 }
 0x194   :  { %v701_v52 = vpop.xlane.xlu0 %700 }
 0x195   :  { %740 = vst.msk [vmem:[%s1867_s3 + $0x20] sm:$0xff] %vm735_vm6, %v701_v52 }
 0x198   :  { %v707_v8 = vpop.xlane.xlu0 %706 }
 0x199   :  { %742 = vst.msk [vmem:[%s1867_s3 + $0x30] sm:$0xff] %vm735_vm6, %v707_v8 }
 0x19c   :  { %v713_v25 = vpop.xlane.xlu0 %712 }
 0x19d   :  { %744 = vst.msk [vmem:[%s1867_s3 + $0x40] sm:$0xff] %vm735_vm6, %v713_v25 }
 0x1a0   :  { %v689_v45 = vpop.xlane.xlu1 %688  ;;  %v719_v44 = vpop.xlane.xlu0 %718 }
 0x1a1   :  { %736 = vst.msk [vmem:[%s1867_s3] sm:$0xff] %vm735_vm6, %v689_v45  ;;  %746 = vst.msk [vmem:[%s1867_s3 + $0x50] sm:$0xff] %vm735_vm6, %v719_v44 }
 0x1a4   :  { %v698_v10 = vpop.xlane.xlu1 %697  ;;  %v725_v58 = vpop.xlane.xlu0 %724 }
 0x1a5   :  { %739 = vst.msk [vmem:[%s1867_s3 + $0x18] sm:$0xff] %vm735_vm6, %v698_v10  ;;  %748 = vst.msk [vmem:[%s1867_s3 + $0x60] sm:$0xff] %vm735_vm6, %v725_v58 }
 0x1a8   :  { %v704_v63 = vpop.xlane.xlu1 %703  ;;  %v731_v55 = vpop.xlane.xlu0 %730 }
 0x1a9   :  { %741 = vst.msk [vmem:[%s1867_s3 + $0x28] sm:$0xff] %vm735_vm6, %v704_v63  ;;  %750 = vst.msk [vmem:[%s1867_s3 + $0x70] sm:$0xff] %vm735_vm6, %v731_v55 }
 0x1ac   :  { %v710_v12 = vpop.xlane.xlu1 %709  ;;  %v825_v54 = vpop.permute.xlu0 %824 }
 0x1ad   :  { %743 = vst.msk [vmem:[%s1867_s3 + $0x38] sm:$0xff] %vm735_vm6, %v710_v12  ;;  %v827_v19 = vunpack.i.h.bf16 %v825_v54  ;;  %v826_v4 = vunpack.i.l.bf16 %v825_v54 }
 0x1af   :  { %v571_v18 = vsel %vm61_vm0, %v1686_v27, %v827_v19  ;;  %v570_v21 = vsel %vm61_vm0, %v1627_v9, %v826_v4 }
 0x1b0   :  { %v789_v6 = vpack.c.bf16 %v571_v18, %v571_v18  ;;  %v788_v26 = vpack.c.bf16 %v570_v21, %v570_v21  ;;  %v716_v41 = vpop.xlane.xlu1 %715 }
 0x1b1   :  { %745 = vst.msk [vmem:[%s1867_s3 + $0x48] sm:$0xff] %vm735_vm6, %v716_v41 }
 0x1b2   :  { %652 = vst.msk [vmem:[%s1866_s2 + $0x34] sm:$0xf] %vm638_vm5, %v789_v6  ;;  %651 = vst.msk [vmem:[%s1866_s2 + $0x30] sm:$0xf] %vm638_vm5, %v788_v26 }
 0x1b4   :  { %v722_v27 = vpop.xlane.xlu1 %721 }
 0x1b5   :  { %747 = vst.msk [vmem:[%s1867_s3 + $0x58] sm:$0xff] %vm735_vm6, %v722_v27 }
 0x1b8   :  { %v728_v9 = vpop.xlane.xlu1 %727 }
 0x1b9   :  { %749 = vst.msk [vmem:[%s1867_s3 + $0x68] sm:$0xff] %vm735_vm6, %v728_v9 }
 0x1bc   :  { %v734_v57 = vpop.xlane.xlu1 %733 }
 0x1bd   :  { %751 = vst.msk [vmem:[%s1867_s3 + $0x78] sm:$0xff] %vm735_vm6, %v734_v57 }
 0x1c0   :  { %v830_v31 = vpop.permute.xlu1 %829 }
 0x1c1   :  { %v832_v34 = vunpack.i.h.bf16 %v830_v31  ;;  %v831_v49 = vunpack.i.l.bf16 %v830_v31 }
 0x1c3   :  { %v573_v14 = vsel %vm61_vm0, %v1694_v40, %v832_v34  ;;  %v572_v33 = vsel %vm61_vm0, %v1648_v5, %v831_v49 }
 0x1c4   :  { %v791_v32 = vpack.c.bf16 %v573_v14, %v573_v14  ;;  %v790_v28 = vpack.c.bf16 %v572_v33, %v572_v33 }
 0x1c6   :  { %654 = vst.msk [vmem:[%s1866_s2 + $0x3c] sm:$0xf] %vm638_vm5, %v791_v32  ;;  %653 = vst.msk [vmem:[%s1866_s2 + $0x38] sm:$0xf] %vm638_vm5, %v790_v28 }

// kernel: ikd_level_loss.3
= control target key start
LH: loop header
LB: loop body
LE: loop exit
PB: predicated region body
PF: predicated region fallthrough
CT: control target
= control target key end

     0   :  { %13 = vsyncpa [#allocation8], 0  ;;  %v739_v0 = vmov 0.0   ;;  %s938_s0 = inlined_call_operand.<no memory space> [shape: s32[1], index: 0, kind: input, shape index: {}, may-alias: {0,1}]   ;;  %s939_s1 = inlined_call_operand.<no memory space> [shape: s32[1], index: 1, kind: input, shape index: {}, may-alias: {0,1}]   ;;  %s940_s2 = inlined_call_operand.<no memory space> [shape: s32[1], index: 2, kind: input, shape index: {}]   ;;  %s941_s3 = inlined_call_operand.vmem [shape: bf16[128,16], index: 3, kind: input, shape index: {}, may-alias: {3,4}]   ;;  %s942_s4 = inlined_call_operand.vmem [shape: bf16[128,16], index: 4, kind: input, shape index: {}, may-alias: {3,4}]   ;;  %s943_s5 = inlined_call_operand.hbm [shape: f32[1,1], index: 5, kind: output, shape index: {}]  }
   0x1   :  { %s590_s20 = sadd.s32 4294967295, %s940_s2  ;;  %p146_p0 = scmp.lt.s32.totalorder %s938_s0, %s940_s2  ;;  %127 = vst [vmem:[#allocation2] sm:$0xff] %v739_v0  ;;  %128 = vst [vmem:[#allocation2 + $0x8] sm:$0xff] %v739_v0 }
   0x2   :  { %p781_p1 = scmp.gt.s32.totalorder %s590_s20, 0  ;;  %129 = vst [vmem:[#allocation2 + $0x10] sm:$0xff] %v739_v0  ;;  %130 = vst [vmem:[#allocation2 + $0x18] sm:$0xff] %v739_v0  ;;  %p147_p2 = scmp.lt.s32.totalorder %s939_s1, %s940_s2 }
   0x3   :  { %131 = vst [vmem:[#allocation2 + $0x20] sm:$0xff] %v739_v0  ;;  %132 = vst [vmem:[#allocation2 + $0x28] sm:$0xff] %v739_v0 }
   0x4   :  { %133 = vst [vmem:[#allocation2 + $0x30] sm:$0xff] %v739_v0  ;;  %134 = vst [vmem:[#allocation2 + $0x38] sm:$0xff] %v739_v0  ;;  %s947_s20 = smov (!%p781_p1, %s590_s20), 0  ;;  %p800_p3 = pnand %p147_p2, %p146_p0 }
   0x5   :  { %135 = vst [vmem:[#allocation2 + $0x40] sm:$0xff] %v739_v0  ;;  %136 = vst [vmem:[#allocation2 + $0x48] sm:$0xff] %v739_v0  ;;  %p87_p4 = scmp.lt.s32.totalorder %s938_s0, %s947_s20  ;;  %p107_p5 = scmp.lt.s32.totalorder %s939_s1, %s947_s20  ;;  %v152_v1 = vlaneseq (!%p800_p3)  ;;  %vm289_vm0 = vcmask (!%p800_p3), 130048   ;;  %v740_v7 = vmov (!%p800_p3), -1.0  }
   0x6   :  { %137 = vst [vmem:[#allocation2 + $0x50] sm:$0xff] %v739_v0  ;;  %138 = vst [vmem:[#allocation2 + $0x58] sm:$0xff] %v739_v0  ;;  %p435_p8 = scmp.eq.s32.totalorder (!%p800_p3), %s938_s0, %s939_s1 }
   0x7   :  { %139 = vst [vmem:[#allocation2 + $0x60] sm:$0xff] %v739_v0  ;;  %140 = vst [vmem:[#allocation2 + $0x68] sm:$0xff] %v739_v0  ;;  %s88_s16 = scalar_select %p87_p4, %s938_s0, %s947_s20 }
   0x8   :  { %141 = vst [vmem:[#allocation2 + $0x70] sm:$0xff] %v739_v0  ;;  %142 = vst [vmem:[#allocation2 + $0x78] sm:$0xff] %v739_v0  ;;  %s108_s2 = scalar_select %p107_p5, %s939_s1, %s947_s20 }
   0x9   :  { %s591_s19 = sshll.u32 %s88_s16, 4  ;;  %151 = sbr.rel (%p800_p3) target bundleno = 315 (0x13b), region = 17  ;;  %v153_v2 = vand.u32 (!%p800_p3), 127, %v152_v1 }
   0xa   :  { %p90_p6 = scmp.lt.s32.totalorder %s591_s19, 15  ;;  %s594_s21 = sshll.u32 %s108_s2, 4 }
   0xb   :  { %p110_p7 = scmp.lt.s32.totalorder %s594_s21, 15  ;;  %vm154_vm1 = vcmp.lt.s32.totalorder (!%p800_p3), %v153_v2, 8 }
   0xc   :  { %s949_s19 = smov (!%p90_p6, %s591_s19), 15  ;;  %v155_v8 = vsel (!%p800_p3), %vm154_vm1, 1.0, %v740_v7 }
   0xd   :  { %s951_s21 = smov (!%p110_p7, %s594_s21), 15  ;;  %s592_s22 = sshll.u32 %s949_s19, 2  ;;  %v835_v11 = vpack.c.bf16 (!%p800_p3), %v155_v8, %v155_v8 }
   0xe   :  { %s819_s25 = scalar_lea.vmem %s941_s3, %s592_s22  ;;  %s595_s26 = sshll.u32 %s951_s21, 2 }
   0xf   :  { %s824_s29 = scalar_lea.vmem %s942_s4, %s595_s26  ;;  %v707_v3 = vld [vmem:[%s819_s25] sm:$0xff] (!%p800_p3)   ;;  %v709_v56 = vld [vmem:[%s819_s25 + $0x8] sm:$0xff] (!%p800_p3)   ;;  %v711_v58 = vld [vmem:[%s819_s25 + $0x10] sm:$0xff] (!%p800_p3)  }
  0x10   :  { %v173_v4 = vld [vmem:[%s824_s29] sm:$0xf]  ;;  %v174_v5 = vld [vmem:[%s824_s29 + $0x4] sm:$0xf]  ;;  %654 = vmatprep.mubr.msk.bf16.mxu0 %vm289_vm0, %v707_v3  ;;  %v175_v9 = vld [vmem:[%s824_s29 + $0x8] sm:$0xf] }
  0x11   :  { %v708_v6 = vld [vmem:[%s819_s25 + $0x20] sm:$0xff]   ;;  %v176_v10 = vld [vmem:[%s824_s29 + $0xc] sm:$0xf]  ;;  %v193_v12 = vmul.bf16 %v835_v11, %v173_v4  ;;  %v194_v13 = vmul.bf16 %v835_v11, %v174_v5  ;;  %v195_v14 = vmul.bf16 %v835_v11, %v175_v9  ;;  %v177_v18 = vld [vmem:[%s824_s29 + $0x10] sm:$0xf] }
  0x12   :  { %662 = vmatprep.mubr.msk.bf16.mxu1 %vm289_vm0, %v708_v6  ;;  %v196_v15 = vmul.bf16 %v835_v11, %v176_v10  ;;  %v178_v19 = vld [vmem:[%s824_s29 + $0x14] sm:$0xf]  ;;  %v197_v21 = vmul.bf16 %v835_v11, %v177_v18  ;;  %v179_v25 = vld [vmem:[%s824_s29 + $0x18] sm:$0xf]  ;;  %v180_v26 = vld [vmem:[%s824_s29 + $0x1c] sm:$0xf] }
  0x13   :  { %v605_v16 = vcombine.low %v193_v12, %v194_v13  ;;  %v198_v22 = vmul.bf16 %v835_v11, %v178_v19  ;;  %v199_v27 = vmul.bf16 %v835_v11, %v179_v25  ;;  %v200_v28 = vmul.bf16 %v835_v11, %v180_v26  ;;  %v181_v31 = vld [vmem:[%s824_s29 + $0x20] sm:$0xf]  ;;  %v182_v32 = vld [vmem:[%s824_s29 + $0x24] sm:$0xf]  ;;  %v183_v37 = vld [vmem:[%s824_s29 + $0x28] sm:$0xf] }
  0x14   :  { %v606_v17 = vcombine.low %v195_v14, %v196_v15  ;;  %v201_v33 = vmul.bf16 %v835_v11, %v181_v31  ;;  %v202_v34 = vmul.bf16 %v835_v11, %v182_v32  ;;  %v184_v38 = vld [vmem:[%s824_s29 + $0x2c] sm:$0xf]  ;;  %v203_v39 = vmul.bf16 %v835_v11, %v183_v37  ;;  %v185_v43 = vld [vmem:[%s824_s29 + $0x30] sm:$0xf]  ;;  %v186_v44 = vld [vmem:[%s824_s29 + $0x34] sm:$0xf] }
  0x15   :  { %686 = vmatprep.subr.msk.bf16.mxu0 %vm289_vm0, %v605_v16  ;;  %687 = vmatprep.subr.msk.bf16.mxu1 %vm289_vm0, %v605_v16  ;;  %v315_v20 = vsel %vm289_vm0, %v605_v16, 0  ;;  %v607_v24 = vcombine.low %v197_v21, %v198_v22  ;;  %v608_v30 = vcombine.low %v199_v27, %v200_v28  ;;  %v204_v40 = vmul.bf16 %v835_v11, %v184_v38  ;;  %v187_v49 = vld [vmem:[%s824_s29 + $0x38] sm:$0xf]  ;;  %v188_v50 = vld [vmem:[%s824_s29 + $0x3c] sm:$0xf]  ;;  %v710_v57 = vld [vmem:[%s819_s25 + $0x28] sm:$0xff]  }
  0x16   :  { %639 = vmatpush3.bf16.xpose.msra.mxu0 %v315_v20  ;;  %678 = vmatpush3.bf16.xpose.msra.mxu1 %v315_v20  ;;  %v318_v23 = vsel %vm289_vm0, %v606_v17, 0  ;;  %v609_v36 = vcombine.low %v201_v33, %v202_v34  ;;  %v205_v45 = vmul.bf16 %v835_v11, %v185_v43  ;;  %v206_v46 = vmul.bf16 %v835_v11, %v186_v44  ;;  %v712_v59 = vld [vmem:[%s819_s25 + $0x30] sm:$0xff]   ;;  %v713_v60 = vld [vmem:[%s819_s25 + $0x18] sm:$0xff]   ;;  %s436_s6 = scalar_select %p435_p8, 1.0, 2.0  ;;  %v437_v13 = vld [vmem:[#allocation2] sm:$0xff] }
  0x17   :  { %688 = vmatprep.subr.msk.bf16.mxu0 %vm289_vm0, %v606_v17  ;;  %689 = vmatprep.subr.msk.bf16.mxu1 %vm289_vm0, %v606_v17  ;;  %v321_v29 = vsel %vm289_vm0, %v607_v24, 0  ;;  %v324_v35 = vsel %vm289_vm0, %v608_v30, 0  ;;  %v610_v42 = vcombine.low %v203_v39, %v204_v40  ;;  %v207_v51 = vmul.bf16 %v835_v11, %v187_v49  ;;  %v714_v61 = vld [vmem:[%s819_s25 + $0x38] sm:$0xff]   ;;  %v439_v5 = vld [vmem:[#allocation2 + $0x10] sm:$0xff]  ;;  %v445_v14 = vld [vmem:[#allocation2 + $0x40] sm:$0xff] }
  0x18   :  { %v327_v41 = vsel %vm289_vm0, %v609_v36, 0  ;;  %v611_v48 = vcombine.low %v205_v45, %v206_v46  ;;  %v208_v52 = vmul.bf16 %v835_v11, %v188_v50  ;;  %v908_v63 = vstv %s436_s6  ;;  %v447_v6 = vld [vmem:[#allocation2 + $0x50] sm:$0xff]  ;;  %v440_v21 = vld [vmem:[#allocation2 + $0x18] sm:$0xff] }
  0x19   :  { %v330_v47 = vsel %vm289_vm0, %v610_v42, 0  ;;  %v448_v22 = vld [vmem:[#allocation2 + $0x58] sm:$0xff]  ;;  %v443_v45 = vld [vmem:[#allocation2 + $0x30] sm:$0xff] }
  0x1a   :  { %v333_v53 = vsel %vm289_vm0, %v611_v48, 0  ;;  %v612_v54 = vcombine.low %v207_v51, %v208_v52  ;;  %v451_v46 = vld [vmem:[#allocation2 + $0x70] sm:$0xff] }
  0x1c   :  { %v336_v55 = vsel %vm289_vm0, %v612_v54, 0 }
  0x1e   :  { %641 = vmatpush3.bf16.xpose.msra.mxu0 %v318_v23  ;;  %679 = vmatpush3.bf16.xpose.msra.mxu1 %v318_v23 }
  0x1f   :  { %690 = vmatprep.subr.msk.bf16.mxu0 %vm289_vm0, %v607_v24  ;;  %691 = vmatprep.subr.msk.bf16.mxu1 %vm289_vm0, %v607_v24 }
  0x26   :  { %643 = vmatpush3.bf16.xpose.msra.mxu0 %v321_v29  ;;  %680 = vmatpush3.bf16.xpose.msra.mxu1 %v321_v29  ;;  %v438_v29 = vld [vmem:[#allocation2 + $0x8] sm:$0xff] }
  0x27   :  { %692 = vmatprep.subr.msk.bf16.mxu0 %vm289_vm0, %v608_v30  ;;  %693 = vmatprep.subr.msk.bf16.mxu1 %vm289_vm0, %v608_v30  ;;  %v446_v30 = vld [vmem:[#allocation2 + $0x48] sm:$0xff] }
  0x2e   :  { %645 = vmatpush3.bf16.xpose.msra.mxu0 %v324_v35  ;;  %681 = vmatpush3.bf16.xpose.msra.mxu1 %v324_v35 }
  0x2f   :  { %694 = vmatprep.subr.msk.bf16.mxu0 %vm289_vm0, %v609_v36  ;;  %695 = vmatprep.subr.msk.bf16.mxu1 %vm289_vm0, %v609_v36 }
  0x36   :  { %647 = vmatpush3.bf16.xpose.msra.mxu0 %v327_v41  ;;  %682 = vmatpush3.bf16.xpose.msra.mxu1 %v327_v41 }
  0x37   :  { %696 = vmatprep.subr.msk.bf16.mxu0 %vm289_vm0, %v610_v42  ;;  %697 = vmatprep.subr.msk.bf16.mxu1 %vm289_vm0, %v610_v42 }
  0x3e   :  { %649 = vmatpush3.bf16.xpose.msra.mxu0 %v330_v47  ;;  %683 = vmatpush3.bf16.xpose.msra.mxu1 %v330_v47 }
  0x3f   :  { %698 = vmatprep.subr.msk.bf16.mxu0 %vm289_vm0, %v611_v48  ;;  %699 = vmatprep.subr.msk.bf16.mxu1 %vm289_vm0, %v611_v48 }
  0x46   :  { %651 = vmatpush3.bf16.xpose.msra.mxu0 %v333_v53  ;;  %684 = vmatpush3.bf16.xpose.msra.mxu1 %v333_v53  ;;  %v441_v53 = vld [vmem:[#allocation2 + $0x20] sm:$0xff] }
  0x47   :  { %700 = vmatprep.subr.msk.bf16.mxu0 %vm289_vm0, %v612_v54  ;;  %701 = vmatprep.subr.msk.bf16.mxu1 %vm289_vm0, %v612_v54  ;;  %v449_v54 = vld [vmem:[#allocation2 + $0x60] sm:$0xff] }
  0x4e   :  { %653 = vmatpush3.bf16.xpose.msra.mxu0 %v336_v55  ;;  %685 = vmatpush3.bf16.xpose.msra.mxu1 %v336_v55 }
  0x55   :  { %655 = vmatmul.mubr.msk.bf16.vlgmr.msra.gmra.mrb[0].mxu0 %vm289_vm0, %v709_v56  ;;  %663 = vmatmul.mubr.msk.bf16.vlgmr.msra.gmra.mrb[0].mxu1 %vm289_vm0, %v710_v57 }
  0x56   :  { %658 = vmatprep.mubr.msk.bf16.mxu0 %vm289_vm0, %v711_v58  ;;  %666 = vmatprep.mubr.msk.bf16.mxu1 %vm289_vm0, %v712_v59 }
  0x5d   :  { %659 = vmatmul.mubr.msk.bf16.gmra.mrb[4].mxu0 %vm289_vm0, %v713_v60  ;;  %667 = vmatmul.mubr.msk.bf16.gmra.mrb[4].mxu1 %vm289_vm0, %v714_v61  ;;  %v444_v61 = vld [vmem:[#allocation2 + $0x38] sm:$0xff] }
 0x128   :  { %v656_v62 = vpop.f32.mrb[0].mxu0  ;;  %v664_v0 = vpop.f32.mrb[0].mxu1 }
 0x129   :  { %v455_v1 = vmul.f32 %v656_v62, %v656_v62  ;;  %v463_v2 = vmul.f32 %v664_v0, %v664_v0  ;;  %v372_v3 = vpop.f32.mrb[1].mxu0  ;;  %v404_v4 = vpop.f32.mrb[1].mxu1  ;;  %v452_v62 = vld [vmem:[#allocation2 + $0x78] sm:$0xff] }
 0x12a   :  { %v453_v7 = vmul.f32 %v372_v3, %v372_v3  ;;  %v461_v8 = vmul.f32 %v404_v4, %v404_v4  ;;  %v657_v9 = vpop.f32.mrb[2].mxu0  ;;  %v665_v10 = vpop.f32.mrb[2].mxu1 }
 0x12b   :  { %v472_v11 = vmul.f32 %v908_v63, %v455_v1  ;;  %v480_v12 = vmul.f32 %v908_v63, %v463_v2  ;;  %v456_v15 = vmul.f32 %v657_v9, %v657_v9  ;;  %v464_v16 = vmul.f32 %v665_v10, %v665_v10  ;;  %v375_v17 = vpop.f32.mrb[3].mxu0  ;;  %v407_v18 = vpop.f32.mrb[3].mxu1 }
 0x12c   :  { %v470_v19 = vmul.f32 %v908_v63, %v453_v7  ;;  %v478_v20 = vmul.f32 %v908_v63, %v461_v8  ;;  %v454_v23 = vmul.f32 %v375_v17, %v375_v17  ;;  %v462_v24 = vmul.f32 %v407_v18, %v407_v18  ;;  %v450_v7 = vld [vmem:[#allocation2 + $0x68] sm:$0xff] }
 0x12d   :  { %v488_v25 = vadd.f32 %v472_v11, %v439_v5  ;;  %v496_v26 = vadd.f32 %v480_v12, %v447_v6  ;;  %v473_v27 = vmul.f32 %v908_v63, %v456_v15  ;;  %v481_v28 = vmul.f32 %v908_v63, %v464_v16  ;;  %v442_v6 = vld [vmem:[#allocation2 + $0x28] sm:$0xff] }
 0x12e   :  { %v486_v31 = vadd.f32 %v470_v19, %v437_v13  ;;  %v494_v32 = vadd.f32 %v478_v20, %v445_v14  ;;  %v471_v33 = vmul.f32 %v908_v63, %v454_v23  ;;  %v479_v34 = vmul.f32 %v908_v63, %v462_v24 }
 0x12f   :  { %504 = vst [vmem:[#allocation2 + $0x10] sm:$0xff] %v488_v25  ;;  %512 = vst [vmem:[#allocation2 + $0x50] sm:$0xff] %v496_v26  ;;  %v489_v35 = vadd.f32 %v473_v27, %v440_v21  ;;  %v497_v36 = vadd.f32 %v481_v28, %v448_v22 }
 0x130   :  { %502 = vst [vmem:[#allocation2] sm:$0xff] %v486_v31  ;;  %510 = vst [vmem:[#allocation2 + $0x40] sm:$0xff] %v494_v32  ;;  %v487_v37 = vadd.f32 %v471_v33, %v438_v29  ;;  %v495_v38 = vadd.f32 %v479_v34, %v446_v30  ;;  %v660_v39 = vpop.f32.mrb[4].mxu0  ;;  %v668_v40 = vpop.f32.mrb[4].mxu1 }
 0x131   :  { %505 = vst [vmem:[#allocation2 + $0x18] sm:$0xff] %v489_v35  ;;  %513 = vst [vmem:[#allocation2 + $0x58] sm:$0xff] %v497_v36  ;;  %v459_v41 = vmul.f32 %v660_v39, %v660_v39  ;;  %v467_v42 = vmul.f32 %v668_v40, %v668_v40  ;;  %v388_v43 = vpop.f32.mrb[5].mxu0  ;;  %v420_v44 = vpop.f32.mrb[5].mxu1 }
 0x132   :  { %503 = vst [vmem:[#allocation2 + $0x8] sm:$0xff] %v487_v37  ;;  %511 = vst [vmem:[#allocation2 + $0x48] sm:$0xff] %v495_v38  ;;  %v457_v47 = vmul.f32 %v388_v43, %v388_v43  ;;  %v465_v48 = vmul.f32 %v420_v44, %v420_v44  ;;  %v661_v49 = vpop.f32.mrb[6].mxu0  ;;  %v669_v50 = vpop.f32.mrb[6].mxu1 }
 0x133   :  { %v476_v51 = vmul.f32 %v908_v63, %v459_v41  ;;  %v484_v52 = vmul.f32 %v908_v63, %v467_v42  ;;  %v460_v55 = vmul.f32 %v661_v49, %v661_v49  ;;  %v468_v56 = vmul.f32 %v669_v50, %v669_v50  ;;  %v391_v57 = vpop.f32.mrb[7].mxu0  ;;  %v423_v58 = vpop.f32.mrb[7].mxu1 }
 0x134   :  { %v474_v59 = vmul.f32 %v908_v63, %v457_v47  ;;  %v482_v60 = vmul.f32 %v908_v63, %v465_v48  ;;  %v458_v0 = vmul.f32 %v391_v57, %v391_v57  ;;  %v466_v1 = vmul.f32 %v423_v58, %v423_v58 }
 0x135   :  { %v492_v2 = vadd.f32 %v476_v51, %v443_v45  ;;  %v500_v3 = vadd.f32 %v484_v52, %v451_v46  ;;  %v477_v4 = vmul.f32 %v908_v63, %v460_v55  ;;  %v485_v5 = vmul.f32 %v908_v63, %v468_v56 }
 0x136   :  { %v490_v8 = vadd.f32 %v474_v59, %v441_v53  ;;  %v498_v9 = vadd.f32 %v482_v60, %v449_v54  ;;  %v475_v10 = vmul.f32 %v908_v63, %v458_v0  ;;  %v483_v11 = vmul.f32 %v908_v63, %v466_v1 }
 0x137   :  { %508 = vst [vmem:[#allocation2 + $0x30] sm:$0xff] %v492_v2  ;;  %516 = vst [vmem:[#allocation2 + $0x70] sm:$0xff] %v500_v3  ;;  %v493_v12 = vadd.f32 %v477_v4, %v444_v61  ;;  %v501_v13 = vadd.f32 %v485_v5, %v452_v62 }
 0x138   :  { %506 = vst [vmem:[#allocation2 + $0x20] sm:$0xff] %v490_v8  ;;  %514 = vst [vmem:[#allocation2 + $0x60] sm:$0xff] %v498_v9  ;;  %v491_v14 = vadd.f32 %v475_v10, %v442_v6  ;;  %v499_v15 = vadd.f32 %v483_v11, %v450_v7 }
 0x139   :  { %509 = vst [vmem:[#allocation2 + $0x38] sm:$0xff] %v493_v12  ;;  %517 = vst [vmem:[#allocation2 + $0x78] sm:$0xff] %v501_v13 }
 0x13a   :  { %507 = vst [vmem:[#allocation2 + $0x28] sm:$0xff] %v491_v14  ;;  %515 = vst [vmem:[#allocation2 + $0x68] sm:$0xff] %v499_v15 }
 0x13b PF:  { %v521_v16 = vld [vmem:[#allocation2] sm:$0xff]  ;;  %v522_v17 = vld [vmem:[#allocation2 + $0x8] sm:$0xff]  ;;  %v523_v18 = vld [vmem:[#allocation2 + $0x10] sm:$0xff]  ;;  %s741_s0 = smov [#allocation7]   ;;  %vm562_vm2 = vcmask 0  }
 0x13c   :  { %v537_v19 = vadd.f32 %v522_v17, %v521_v16  ;;  %v524_v20 = vld [vmem:[#allocation2 + $0x18] sm:$0xff]  ;;  %v529_v29 = vld [vmem:[#allocation2 + $0x40] sm:$0xff]  ;;  %v530_v31 = vld [vmem:[#allocation2 + $0x48] sm:$0xff]  ;;  %s570_s1 = sshll.u32 %s741_s0, 4  ;;  %s571_s1 = int_to_ptr.vmem [resolvable:$true] %s570_s1 }
 0x13d   :  { %v531_v33 = vld [vmem:[#allocation2 + $0x50] sm:$0xff]  ;;  %v532_v35 = vld [vmem:[#allocation2 + $0x58] sm:$0xff]  ;;  %s715_s8 = scalar_lea.vmem %s571_s1, 16  ;;  %s719_s9 = scalar_lea.vmem %s571_s1, 32 }
 0x13e   :  { %v538_v21 = vadd.f32 %v537_v19, %v523_v18  ;;  %v527_v25 = vld [vmem:[#allocation2 + $0x30] sm:$0xff]  ;;  %p716_p9 = scmp.ne.s32.totalorder %s571_s1, %s715_s8  ;;  %p720_p10 = scmp.lt.s32.totalorder %s571_s1, %s571_s1 }
 0x13f   :  { %v525_v63 = vld [vmem:[#allocation2 + $0x20] sm:$0xff]  ;;  %v535_v41 = vld [vmem:[#allocation2 + $0x70] sm:$0xff]  ;;  %p721_p11 = scmp.lt.s32.totalorder %s719_s9, %s715_s8 }
 0x140   :  { %v539_v22 = vadd.f32 %v538_v21, %v524_v20  ;;  %v528_v27 = vld [vmem:[#allocation2 + $0x38] sm:$0xff]  ;;  %v533_v37 = vld [vmem:[#allocation2 + $0x60] sm:$0xff] }
 0x141   :  { %v526_v23 = vld [vmem:[#allocation2 + $0x28] sm:$0xff]  ;;  %v536_v43 = vld [vmem:[#allocation2 + $0x78] sm:$0xff]  ;;  %p722_p12 = por %p721_p11, %p720_p10 }
 0x142   :  { %v540_v24 = vadd.f32 %v539_v22, %v525_v63  ;;  %v534_v39 = vld [vmem:[#allocation2 + $0x68] sm:$0xff] }
 0x143   :  { %p723_p13 = pnand %p722_p12, %p716_p9 }
 0x144   :  { %v541_v26 = vadd.f32 %v540_v24, %v526_v23 }
 0x146   :  { %v542_v28 = vadd.f32 %v541_v26, %v527_v25 }
 0x148   :  { %v543_v30 = vadd.f32 %v542_v28, %v528_v27 }
 0x14a   :  { %v544_v32 = vadd.f32 %v543_v30, %v529_v29 }
 0x14c   :  { %v545_v34 = vadd.f32 %v544_v32, %v530_v31 }
 0x14e   :  { %v546_v36 = vadd.f32 %v545_v34, %v531_v33 }
 0x150   :  { %v547_v38 = vadd.f32 %v546_v36, %v532_v35 }
 0x152   :  { %v548_v40 = vadd.f32 %v547_v38, %v533_v37 }
 0x154   :  { %v549_v42 = vadd.f32 %v548_v40, %v534_v39 }
 0x156   :  { %v550_v44 = vadd.f32 %v549_v42, %v535_v41 }
 0x158   :  { %v551_v45 = vadd.f32 %v550_v44, %v536_v43 }
 0x15a   :  { %552 = vadd.xlane.f32.xlu0 %v551_v45 }
 0x1e7   :  { %v553_v46 = vpop.xlane.xlu0 %552 }
 0x1e8   :  { %v554_v47 = vrot.slane %v553_v46, 4 }
 0x1ea   :  { %v555_v48 = vadd.f32 %v554_v47, %v553_v46 }
 0x1ec   :  { %v556_v49 = vrot.slane %v555_v48, 2 }
 0x1ee   :  { %v557_v50 = vadd.f32 %v556_v49, %v555_v48 }
 0x1f0   :  { %v558_v51 = vrot.slane %v557_v50, 1 }
 0x1f2   :  { %v559_v52 = vadd.f32 %v558_v51, %v557_v50 }
 0x1f4   :  { %702 = vpush %v559_v52 }
 0x225   :  { %s703_s7 = spop %702 }
 0x226   :  { %v561_v53 = vstv %s703_s7 }
 0x227   :  { %563 = vst.msk [vmem:[#allocation7] sm:$0x1] %vm562_vm2, %v561_v53 }
 0x228   :  { %726 = shalt.err (!%p723_p13)
}
 0x229   :  { %s727_s12 = scalar_lea.hbm %s943_s5, 16 }
 0x22a   :  { %p728_p0 = scmp.ne.s32.totalorder %s943_s5, %s727_s12  ;;  %p731_p1 = scmp.lt.u32.totalorder %s727_s12, %s943_s5 }
 0x22c   :  { %p733_p2 = pnand %p731_p1, %p728_p0 }
 0x22e   :  { %736 = shalt.err (!%p733_p2)
}
 0x22f   :  { %573 = dma.vmem_to_hbm [thread:$0]  %s571_s1, 16, %s943_s5, [#allocation8]  }
 0x230   :  { %737 = dma.done.wait [#allocation8], 16  }
 0x231   :  { %738 = vsyncadd [#allocation8], 4294967280 }
 0x232   :  { %577 = vsyncpa [#allocation8], 1 }

</bundles_post_ra>
